<compile_context>
chip_gen: v7x
topology: tpu7x:2x2x1
jax: 0.10.0
libtpu: 0.0.40
codegen_flags: <defaults>
</compile_context>

<pallas_src>
import functools
import math

import jax
import jax.numpy as jnp
from jax import lax
from jax.experimental import pallas as pl
from jax.experimental.pallas import tpu as pltpu


# --------------- fused MHA kernel: one batch block per grid step ---------------
def _mha_kernel(k_ref, v_ref, q_ref,
                wk_ref, bk_ref, wv_ref, bv_ref, wq_ref, bq_ref,
                wo_ref, bo_ref,
                o_ref,
                *, n_head, d_feature):
    bt, S, d_model = k_ref.shape
    HF = n_head * d_feature

    key = k_ref[...].reshape(bt * S, d_model)      # bf16
    val = v_ref[...].reshape(bt * S, d_model)      # bf16
    qry = q_ref[...].reshape(bt * S, d_model)      # bf16

    # Fused QKV projections across all heads: bf16 MXU operands, f32 accumulate.
    K_all = jnp.dot(key, wk_ref[...], preferred_element_type=jnp.float32) + bk_ref[...]
    V_all = jnp.dot(val, wv_ref[...], preferred_element_type=jnp.float32) + bv_ref[...]
    # 1/sqrt(d_feature) is already folded into wq/bq by the wrapper.
    Q_all = jnp.dot(qry, wq_ref[...], preferred_element_type=jnp.float32) + bq_ref[...]

    # One cast to bf16 for the attention matmuls; softmax math stays in f32.
    Kb = K_all.astype(jnp.bfloat16).reshape(bt, S, HF)
    Vb = V_all.astype(jnp.bfloat16).reshape(bt, S, HF)
    Qb = Q_all.astype(jnp.bfloat16).reshape(bt, S, HF)

    # Per-head softmax attention; head outputs stay in vregs (no VMEM slab).
    heads = []
    for h in range(n_head):
        lo = h * d_feature
        hi = lo + d_feature
        Qh = Qb[:, :, lo:hi]        # (bt, S, F) bf16
        Kh = Kb[:, :, lo:hi]
        Vh = Vb[:, :, lo:hi]

        # Q @ K^T via a transposed batched contraction (no explicit transpose).
        s = lax.dot_general(Qh, Kh, (((2,), (2,)), ((0,), (0,))),
                            preferred_element_type=jnp.float32)     # (bt, S, S) f32

        m = jnp.max(s, axis=-1, keepdims=True)
        p = jnp.exp(s - m)
        p = p * pl.reciprocal(jnp.sum(p, axis=-1, keepdims=True), approx=True)

        heads.append(
            lax.dot_general(p.astype(jnp.bfloat16), Vh,
                            (((2,), (1,)), ((0,), (0,))),
                            preferred_element_type=jnp.float32))    # (bt, S, F) f32

    fm = jnp.concatenate(heads, axis=-1)                            # (bt, S, HF) f32
    out = jnp.dot(fm.astype(jnp.bfloat16).reshape(bt * S, HF), wo_ref[...],
                  preferred_element_type=jnp.float32) + bo_ref[...]
    o_ref[...] = out.reshape(bt, S, d_model).astype(o_ref.dtype)


def _pick_batch_block(B, max_bt=8):
    for bt in range(min(B, max_bt), 0, -1):
        if B % bt == 0:
            return bt
    return 1


def multiple_attention_head(key, value, query, params, *, block_b=None):
    B, S, d_model = key.shape
    Wk, bk, Wv, bv, Wq, bq, Wo, bo = (
        params["Wk"], params["bk"], params["Wv"], params["bv"],
        params["Wq"], params["bq"], params["Wo"], params["bo"])
    H, _, F = Wk.shape
    HF = H * F
    scale = 1.0 / math.sqrt(F)

    # Fuse per-head projection weights across heads ((H, d, F) -> (d, H*F)) and
    # cast to bf16 for the MXU; fold the 1/sqrt(F) score scale into Wq / bq.
    def fuse_w(W, s=1.0):
        return (jnp.transpose(W, (1, 0, 2)).reshape(d_model, HF) * s).astype(jnp.bfloat16)

    def fuse_b(b, s=1.0):
        return (b.reshape(1, HF) * s).astype(jnp.float32)

    Wk_f, Wv_f, Wq_f = fuse_w(Wk), fuse_w(Wv), fuse_w(Wq, scale)
    bk_f, bv_f, bq_f = fuse_b(bk), fuse_b(bv), fuse_b(bq, scale)
    Wo_f = Wo.astype(jnp.bfloat16)
    bo_f = bo.reshape(1, d_model).astype(jnp.float32)

    # bf16 activation streams: halves HBM->VMEM bytes for q/k/v.
    key_b = key.astype(jnp.bfloat16)
    val_b = value.astype(jnp.bfloat16)
    qry_b = query.astype(jnp.bfloat16)

    bt = block_b if block_b is not None else _pick_batch_block(B)
    assert B % bt == 0
    grid = (B // bt,)

    # Rough VMEM working-set estimate: double-buffered activations/outputs,
    # resident weights, live f32 intermediates (projections, fm, per-head scores).
    working = (3 * bt * S * d_model * 2 * 2          # q/k/v blocks (bf16, x2 buffers)
               + 4 * d_model * HF * 2 * 2            # fused weights (bf16, x2 worst case)
               + (3 * HF + d_model) * 4 * 2          # biases (f32)
               + bt * S * d_model * 4 * 2            # output blocks (f32)
               + 8 * bt * S * HF * 4                 # live projections / feature map
               + H * bt * S * S * 4)                 # scores headroom
    vmem_limit = int(min(64 * 2 ** 20, max(32 * 2 ** 20, 2 * working)))

    kernel = functools.partial(_mha_kernel, n_head=H, d_feature=F)

    seq_spec = pl.BlockSpec((bt, S, d_model), lambda b: (b, 0, 0))
    out_spec = pl.BlockSpec((bt, S, d_model), lambda b: (b, 0, 0))

    def const_spec(shape, single_buffered):
        # Grid-invariant weights: resident in VMEM across the whole grid.
        # Single-buffer when supported so the default double buffer doesn't
        # waste VMEM (v7x: 64 MiB physical / 32 MiB default scoped).
        if single_buffered:
            return pl.BlockSpec(shape, lambda b: (0, 0),
                                pipeline_mode=pl.Buffered(1))
        return pl.BlockSpec(shape, lambda b: (0, 0))

    def build(single_buffered):
        wqkv = const_spec((d_model, HF), single_buffered)
        bqkv = const_spec((1, HF), single_buffered)
        wo_s = const_spec((HF, d_model), single_buffered)
        bo_s = const_spec((1, d_model), single_buffered)
        return pl.pallas_call(
            kernel,
            out_shape=jax.ShapeDtypeStruct((B, S, d_model), jnp.float32),
            grid_spec=pltpu.PrefetchScalarGridSpec(
                num_scalar_prefetch=0,
                grid=grid,
                in_specs=[seq_spec, seq_spec, seq_spec,
                          wqkv, bqkv, wqkv, bqkv, wqkv, bqkv,
                          wo_s, bo_s],
                out_specs=out_spec),
            compiler_params=pltpu.CompilerParams(
                dimension_semantics=("parallel",),
                vmem_limit_bytes=vmem_limit),
        )

    args = (key_b, val_b, qry_b, Wk_f, bk_f, Wv_f, bv_f, Wq_f, bq_f, Wo_f, bo_f)

    try_single = hasattr(pl, "Buffered")
    try:
        out = jax.block_until_ready(build(try_single)(*args))
    except Exception:
        # pipeline_mode / Buffered(1) not honored on this jax+libtpu: fall back
        # to default (double) buffering for the grid-invariant weights.
        if not try_single:
            raise
        out = jax.block_until_ready(build(False)(*args))
    return out


# ---------------- pure-JAX reference (f32, for validation) ----------------
def _reference(key, value, query, params):
    Wk, bk, Wv, bv, Wq, bq, Wo, bo = (
        params["Wk"], params["bk"], params["Wv"], params["bv"],
        params["Wq"], params["bq"], params["Wo"], params["bo"])
    H = Wk.shape[0]
    d_feature = Wk.shape[-1]
    feats = []
    for h in range(H):
        K = key @ Wk[h] + bk[h]
        V = value @ Wv[h] + bv[h]
        Q = query @ Wq[h] + bq[h]
        s = (Q @ jnp.swapaxes(K, 1, 2)) / math.sqrt(d_feature)
        p = jax.nn.softmax(s, axis=-1)
        feats.append(p @ V)
    fm = jnp.concatenate(feats, axis=-1)
    return fm @ Wo + bo


def _init_params(rng, d_model, d_feature, n_head):
    # PyTorch nn.Linear default init: U(-1/sqrt(fan_in), 1/sqrt(fan_in))
    def lin(key, fan_in, shape):
        bound = 1.0 / math.sqrt(fan_in)
        return jax.random.uniform(key, shape, jnp.float32, -bound, bound)

    keys = jax.random.split(rng, 8)
    return {
        "Wk": lin(keys[0], d_model, (n_head, d_model, d_feature)),
        "bk": lin(keys[1], d_model, (n_head, 1, d_feature)),
        "Wv": lin(keys[2], d_model, (n_head, d_model, d_feature)),
        "bv": lin(keys[3], d_model, (n_head, 1, d_feature)),
        "Wq": lin(keys[4], d_model, (n_head, d_model, d_feature)),
        "bq": lin(keys[5], d_model, (n_head, 1, d_feature)),
        "Wo": lin(keys[6], n_head * d_feature, (n_head * d_feature, d_model)),
        "bo": lin(keys[7], n_head * d_feature, (1, d_model)),
    }


if __name__ == "__main__":
    B, S, d_model, d_feature, n_head = 2, 8, 32, 16, 4

    root = jax.random.PRNGKey(0)
    k_in, k_key, k_val, k_qry = jax.random.split(root, 4)

    params = _init_params(k_in, d_model, d_feature, n_head)
    key = jax.random.normal(k_key, (B, S, d_model), jnp.float32)
    value = jax.random.normal(k_val, (B, S, d_model), jnp.float32)
    query = jax.random.normal(k_qry, (B, S, d_model), jnp.float32)

    out = multiple_attention_head(key, value, query, params)
    out = jax.block_until_ready(out)

    ref = _reference(key, value, query, params)
    assert out.shape == (B, S, d_model)
    # bf16 MXU operands + approx EUP reciprocal -> relaxed tolerance vs the
    # pure-f32 reference.
    assert jnp.allclose(out, ref, atol=2e-2, rtol=2e-2), "mismatch vs reference"

    print("KERNEL_OK")
</pallas_src>

<mosaic_0001>
module attributes {stable_mosaic.version = 11 : i64} {
  func.func @_mha_kernel(%arg0: i32, %arg1: memref<2x8x32xbf16, #tpu.memory_space<vmem>>, %arg2: memref<2x8x32xbf16, #tpu.memory_space<vmem>>, %arg3: memref<2x8x32xbf16, #tpu.memory_space<vmem>>, %arg4: memref<32x64xbf16, #tpu.memory_space<vmem>>, %arg5: memref<1x64xf32, #tpu.memory_space<vmem>>, %arg6: memref<32x64xbf16, #tpu.memory_space<vmem>>, %arg7: memref<1x64xf32, #tpu.memory_space<vmem>>, %arg8: memref<32x64xbf16, #tpu.memory_space<vmem>>, %arg9: memref<1x64xf32, #tpu.memory_space<vmem>>, %arg10: memref<64x32xbf16, #tpu.memory_space<vmem>>, %arg11: memref<1x32xf32, #tpu.memory_space<vmem>>, %arg12: memref<2x8x32xf32, #tpu.memory_space<vmem>>) attributes {dimension_semantics = [#tpu.dimension_semantics<parallel>], iteration_bounds = array<i64: 1>, scalar_prefetch = 0 : i64, scratch_operands = 0 : i64, tpu.core_type = #tpu.core_type<tc>, window_params = [{transform_indices = @transform_0, window_bounds = array<i64: 2, 8, 32>}, {transform_indices = @transform_1, window_bounds = array<i64: 2, 8, 32>}, {transform_indices = @transform_2, window_bounds = array<i64: 2, 8, 32>}, {pipeline_mode = #tpu.pipeline_mode<synchronous>, transform_indices = @transform_3, window_bounds = array<i64: 32, 64>}, {pipeline_mode = #tpu.pipeline_mode<synchronous>, transform_indices = @transform_4, window_bounds = array<i64: 1, 64>}, {pipeline_mode = #tpu.pipeline_mode<synchronous>, transform_indices = @transform_5, window_bounds = array<i64: 32, 64>}, {pipeline_mode = #tpu.pipeline_mode<synchronous>, transform_indices = @transform_6, window_bounds = array<i64: 1, 64>}, {pipeline_mode = #tpu.pipeline_mode<synchronous>, transform_indices = @transform_7, window_bounds = array<i64: 32, 64>}, {pipeline_mode = #tpu.pipeline_mode<synchronous>, transform_indices = @transform_8, window_bounds = array<i64: 1, 64>}, {pipeline_mode = #tpu.pipeline_mode<synchronous>, transform_indices = @transform_9, window_bounds = array<i64: 64, 32>}, {pipeline_mode = #tpu.pipeline_mode<synchronous>, transform_indices = @transform_10, window_bounds = array<i64: 1, 32>}, {transform_indices = @transform_11, window_bounds = array<i64: 2, 8, 32>}]} {
    %c0 = arith.constant 0 : index
    %c0_0 = arith.constant 0 : index
    %c0_1 = arith.constant 0 : index
    %0 = vector.load %arg1[%c0, %c0_0, %c0_1] : memref<2x8x32xbf16, #tpu.memory_space<vmem>>, vector<2x8x32xbf16>
    %1 = vector.shape_cast %0 : vector<2x8x32xbf16> to vector<16x32xbf16>
    %c0_2 = arith.constant 0 : index
    %c0_3 = arith.constant 0 : index
    %c0_4 = arith.constant 0 : index
    %2 = vector.load %arg2[%c0_2, %c0_3, %c0_4] : memref<2x8x32xbf16, #tpu.memory_space<vmem>>, vector<2x8x32xbf16>
    %3 = vector.shape_cast %2 : vector<2x8x32xbf16> to vector<16x32xbf16>
    %c0_5 = arith.constant 0 : index
    %c0_6 = arith.constant 0 : index
    %c0_7 = arith.constant 0 : index
    %4 = vector.load %arg3[%c0_5, %c0_6, %c0_7] : memref<2x8x32xbf16, #tpu.memory_space<vmem>>, vector<2x8x32xbf16>
    %5 = vector.shape_cast %4 : vector<2x8x32xbf16> to vector<16x32xbf16>
    %c0_8 = arith.constant 0 : index
    %c0_9 = arith.constant 0 : index
    %6 = vector.load %arg4[%c0_8, %c0_9] : memref<32x64xbf16, #tpu.memory_space<vmem>>, vector<32x64xbf16>
    %cst = arith.constant dense<0.000000e+00> : vector<16x64xf32>
    %7 = tpu.matmul %1, %6, %cst {dimension_numbers = #tpu.dot_dimension_numbers<[1], [0], [0], [1], [0, 0, 1, 1], [], []>} : vector<16x32xbf16>, vector<32x64xbf16>, vector<16x64xf32> -> vector<16x64xf32>
    %c0_10 = arith.constant 0 : index
    %c0_11 = arith.constant 0 : index
    %8 = vector.load %arg5[%c0_10, %c0_11] : memref<1x64xf32, #tpu.memory_space<vmem>>, vector<1x64xf32>
    %9 = vector.broadcast %8 : vector<1x64xf32> to vector<16x64xf32>
    %10 = arith.addf %7, %9 : vector<16x64xf32>
    %c0_12 = arith.constant 0 : index
    %c0_13 = arith.constant 0 : index
    %11 = vector.load %arg6[%c0_12, %c0_13] : memref<32x64xbf16, #tpu.memory_space<vmem>>, vector<32x64xbf16>
    %cst_14 = arith.constant dense<0.000000e+00> : vector<16x64xf32>
    %12 = tpu.matmul %3, %11, %cst_14 {dimension_numbers = #tpu.dot_dimension_numbers<[1], [0], [0], [1], [0, 0, 1, 1], [], []>} : vector<16x32xbf16>, vector<32x64xbf16>, vector<16x64xf32> -> vector<16x64xf32>
    %c0_15 = arith.constant 0 : index
    %c0_16 = arith.constant 0 : index
    %13 = vector.load %arg7[%c0_15, %c0_16] : memref<1x64xf32, #tpu.memory_space<vmem>>, vector<1x64xf32>
    %14 = vector.broadcast %13 : vector<1x64xf32> to vector<16x64xf32>
    %15 = arith.addf %12, %14 : vector<16x64xf32>
    %c0_17 = arith.constant 0 : index
    %c0_18 = arith.constant 0 : index
    %16 = vector.load %arg8[%c0_17, %c0_18] : memref<32x64xbf16, #tpu.memory_space<vmem>>, vector<32x64xbf16>
    %cst_19 = arith.constant dense<0.000000e+00> : vector<16x64xf32>
    %17 = tpu.matmul %5, %16, %cst_19 {dimension_numbers = #tpu.dot_dimension_numbers<[1], [0], [0], [1], [0, 0, 1, 1], [], []>} : vector<16x32xbf16>, vector<32x64xbf16>, vector<16x64xf32> -> vector<16x64xf32>
    %c0_20 = arith.constant 0 : index
    %c0_21 = arith.constant 0 : index
    %18 = vector.load %arg9[%c0_20, %c0_21] : memref<1x64xf32, #tpu.memory_space<vmem>>, vector<1x64xf32>
    %19 = vector.broadcast %18 : vector<1x64xf32> to vector<16x64xf32>
    %20 = arith.addf %17, %19 : vector<16x64xf32>
    %21 = arith.truncf %10 : vector<16x64xf32> to vector<16x64xbf16>
    %22 = vector.shape_cast %21 : vector<16x64xbf16> to vector<2x8x64xbf16>
    %23 = arith.truncf %15 : vector<16x64xf32> to vector<16x64xbf16>
    %24 = vector.shape_cast %23 : vector<16x64xbf16> to vector<2x8x64xbf16>
    %25 = arith.truncf %20 : vector<16x64xf32> to vector<16x64xbf16>
    %26 = vector.shape_cast %25 : vector<16x64xbf16> to vector<2x8x64xbf16>
    %27 = vector.extract_strided_slice %26 {offsets = [0, 0, 0], sizes = [2, 8, 16], strides = [1, 1, 1]} : vector<2x8x64xbf16> to vector<2x8x16xbf16>
    %28 = vector.extract_strided_slice %22 {offsets = [0, 0, 0], sizes = [2, 8, 16], strides = [1, 1, 1]} : vector<2x8x64xbf16> to vector<2x8x16xbf16>
    %29 = vector.extract_strided_slice %24 {offsets = [0, 0, 0], sizes = [2, 8, 16], strides = [1, 1, 1]} : vector<2x8x64xbf16> to vector<2x8x16xbf16>
    %cst_22 = arith.constant dense<0.000000e+00> : vector<2x8x8xf32>
    %30 = tpu.matmul %27, %28, %cst_22 {dimension_numbers = #tpu.dot_dimension_numbers<[2], [2], [1], [1], [0, 0, 0, 1, 1, 1], [0], [0]>} : vector<2x8x16xbf16>, vector<2x8x16xbf16>, vector<2x8x8xf32> -> vector<2x8x8xf32>
    %cst_23 = arith.constant dense<0xFF800000> : vector<2x8xf32>
    %31 = vector.multi_reduction <maximumf>, %30, %cst_23 [2] : vector<2x8x8xf32> to vector<2x8xf32>
    %32 = vector.shape_cast %31 : vector<2x8xf32> to vector<2x8x1xf32>
    %33 = vector.broadcast %32 : vector<2x8x1xf32> to vector<2x8x8xf32>
    %34 = arith.subf %30, %33 : vector<2x8x8xf32>
    %35 = math.exp %34 : vector<2x8x8xf32>
    %cst_24 = arith.constant dense<0.000000e+00> : vector<2x8xf32>
    %36 = vector.multi_reduction <add>, %35, %cst_24 [2] : vector<2x8x8xf32> to vector<2x8xf32>
    %37 = vector.shape_cast %36 : vector<2x8xf32> to vector<2x8x1xf32>
    %38 = tpu.reciprocal %37 {approx = true} : vector<2x8x1xf32> -> vector<2x8x1xf32>
    %39 = vector.broadcast %38 : vector<2x8x1xf32> to vector<2x8x8xf32>
    %40 = arith.mulf %35, %39 : vector<2x8x8xf32>
    %41 = arith.truncf %40 : vector<2x8x8xf32> to vector<2x8x8xbf16>
    %cst_25 = arith.constant dense<0.000000e+00> : vector<2x8x16xf32>
    %42 = tpu.matmul %41, %29, %cst_25 {dimension_numbers = #tpu.dot_dimension_numbers<[2], [1], [1], [2], [0, 0, 0, 1, 1, 2], [0], [0]>} : vector<2x8x8xbf16>, vector<2x8x16xbf16>, vector<2x8x16xf32> -> vector<2x8x16xf32>
    %43 = vector.extract_strided_slice %26 {offsets = [0, 0, 16], sizes = [2, 8, 16], strides = [1, 1, 1]} : vector<2x8x64xbf16> to vector<2x8x16xbf16>
    %44 = vector.extract_strided_slice %22 {offsets = [0, 0, 16], sizes = [2, 8, 16], strides = [1, 1, 1]} : vector<2x8x64xbf16> to vector<2x8x16xbf16>
    %45 = vector.extract_strided_slice %24 {offsets = [0, 0, 16], sizes = [2, 8, 16], strides = [1, 1, 1]} : vector<2x8x64xbf16> to vector<2x8x16xbf16>
    %cst_26 = arith.constant dense<0.000000e+00> : vector<2x8x8xf32>
    %46 = tpu.matmul %43, %44, %cst_26 {dimension_numbers = #tpu.dot_dimension_numbers<[2], [2], [1], [1], [0, 0, 0, 1, 1, 1], [0], [0]>} : vector<2x8x16xbf16>, vector<2x8x16xbf16>, vector<2x8x8xf32> -> vector<2x8x8xf32>
    %cst_27 = arith.constant dense<0xFF800000> : vector<2x8xf32>
    %47 = vector.multi_reduction <maximumf>, %46, %cst_27 [2] : vector<2x8x8xf32> to vector<2x8xf32>
    %48 = vector.shape_cast %47 : vector<2x8xf32> to vector<2x8x1xf32>
    %49 = vector.broadcast %48 : vector<2x8x1xf32> to vector<2x8x8xf32>
    %50 = arith.subf %46, %49 : vector<2x8x8xf32>
    %51 = math.exp %50 : vector<2x8x8xf32>
    %cst_28 = arith.constant dense<0.000000e+00> : vector<2x8xf32>
    %52 = vector.multi_reduction <add>, %51, %cst_28 [2] : vector<2x8x8xf32> to vector<2x8xf32>
    %53 = vector.shape_cast %52 : vector<2x8xf32> to vector<2x8x1xf32>
    %54 = tpu.reciprocal %53 {approx = true} : vector<2x8x1xf32> -> vector<2x8x1xf32>
    %55 = vector.broadcast %54 : vector<2x8x1xf32> to vector<2x8x8xf32>
    %56 = arith.mulf %51, %55 : vector<2x8x8xf32>
    %57 = arith.truncf %56 : vector<2x8x8xf32> to vector<2x8x8xbf16>
    %cst_29 = arith.constant dense<0.000000e+00> : vector<2x8x16xf32>
    %58 = tpu.matmul %57, %45, %cst_29 {dimension_numbers = #tpu.dot_dimension_numbers<[2], [1], [1], [2], [0, 0, 0, 1, 1, 2], [0], [0]>} : vector<2x8x8xbf16>, vector<2x8x16xbf16>, vector<2x8x16xf32> -> vector<2x8x16xf32>
    %59 = vector.extract_strided_slice %26 {offsets = [0, 0, 32], sizes = [2, 8, 16], strides = [1, 1, 1]} : vector<2x8x64xbf16> to vector<2x8x16xbf16>
    %60 = vector.extract_strided_slice %22 {offsets = [0, 0, 32], sizes = [2, 8, 16], strides = [1, 1, 1]} : vector<2x8x64xbf16> to vector<2x8x16xbf16>
    %61 = vector.extract_strided_slice %24 {offsets = [0, 0, 32], sizes = [2, 8, 16], strides = [1, 1, 1]} : vector<2x8x64xbf16> to vector<2x8x16xbf16>
    %cst_30 = arith.constant dense<0.000000e+00> : vector<2x8x8xf32>
    %62 = tpu.matmul %59, %60, %cst_30 {dimension_numbers = #tpu.dot_dimension_numbers<[2], [2], [1], [1], [0, 0, 0, 1, 1, 1], [0], [0]>} : vector<2x8x16xbf16>, vector<2x8x16xbf16>, vector<2x8x8xf32> -> vector<2x8x8xf32>
    %cst_31 = arith.constant dense<0xFF800000> : vector<2x8xf32>
    %63 = vector.multi_reduction <maximumf>, %62, %cst_31 [2] : vector<2x8x8xf32> to vector<2x8xf32>
    %64 = vector.shape_cast %63 : vector<2x8xf32> to vector<2x8x1xf32>
    %65 = vector.broadcast %64 : vector<2x8x1xf32> to vector<2x8x8xf32>
    %66 = arith.subf %62, %65 : vector<2x8x8xf32>
    %67 = math.exp %66 : vector<2x8x8xf32>
    %cst_32 = arith.constant dense<0.000000e+00> : vector<2x8xf32>
    %68 = vector.multi_reduction <add>, %67, %cst_32 [2] : vector<2x8x8xf32> to vector<2x8xf32>
    %69 = vector.shape_cast %68 : vector<2x8xf32> to vector<2x8x1xf32>
    %70 = tpu.reciprocal %69 {approx = true} : vector<2x8x1xf32> -> vector<2x8x1xf32>
    %71 = vector.broadcast %70 : vector<2x8x1xf32> to vector<2x8x8xf32>
    %72 = arith.mulf %67, %71 : vector<2x8x8xf32>
    %73 = arith.truncf %72 : vector<2x8x8xf32> to vector<2x8x8xbf16>
    %cst_33 = arith.constant dense<0.000000e+00> : vector<2x8x16xf32>
    %74 = tpu.matmul %73, %61, %cst_33 {dimension_numbers = #tpu.dot_dimension_numbers<[2], [1], [1], [2], [0, 0, 0, 1, 1, 2], [0], [0]>} : vector<2x8x8xbf16>, vector<2x8x16xbf16>, vector<2x8x16xf32> -> vector<2x8x16xf32>
    %75 = vector.extract_strided_slice %26 {offsets = [0, 0, 48], sizes = [2, 8, 16], strides = [1, 1, 1]} : vector<2x8x64xbf16> to vector<2x8x16xbf16>
    %76 = vector.extract_strided_slice %22 {offsets = [0, 0, 48], sizes = [2, 8, 16], strides = [1, 1, 1]} : vector<2x8x64xbf16> to vector<2x8x16xbf16>
    %77 = vector.extract_strided_slice %24 {offsets = [0, 0, 48], sizes = [2, 8, 16], strides = [1, 1, 1]} : vector<2x8x64xbf16> to vector<2x8x16xbf16>
    %cst_34 = arith.constant dense<0.000000e+00> : vector<2x8x8xf32>
    %78 = tpu.matmul %75, %76, %cst_34 {dimension_numbers = #tpu.dot_dimension_numbers<[2], [2], [1], [1], [0, 0, 0, 1, 1, 1], [0], [0]>} : vector<2x8x16xbf16>, vector<2x8x16xbf16>, vector<2x8x8xf32> -> vector<2x8x8xf32>
    %cst_35 = arith.constant dense<0xFF800000> : vector<2x8xf32>
    %79 = vector.multi_reduction <maximumf>, %78, %cst_35 [2] : vector<2x8x8xf32> to vector<2x8xf32>
    %80 = vector.shape_cast %79 : vector<2x8xf32> to vector<2x8x1xf32>
    %81 = vector.broadcast %80 : vector<2x8x1xf32> to vector<2x8x8xf32>
    %82 = arith.subf %78, %81 : vector<2x8x8xf32>
    %83 = math.exp %82 : vector<2x8x8xf32>
    %cst_36 = arith.constant dense<0.000000e+00> : vector<2x8xf32>
    %84 = vector.multi_reduction <add>, %83, %cst_36 [2] : vector<2x8x8xf32> to vector<2x8xf32>
    %85 = vector.shape_cast %84 : vector<2x8xf32> to vector<2x8x1xf32>
    %86 = tpu.reciprocal %85 {approx = true} : vector<2x8x1xf32> -> vector<2x8x1xf32>
    %87 = vector.broadcast %86 : vector<2x8x1xf32> to vector<2x8x8xf32>
    %88 = arith.mulf %83, %87 : vector<2x8x8xf32>
    %89 = arith.truncf %88 : vector<2x8x8xf32> to vector<2x8x8xbf16>
    %cst_37 = arith.constant dense<0.000000e+00> : vector<2x8x16xf32>
    %90 = tpu.matmul %89, %77, %cst_37 {dimension_numbers = #tpu.dot_dimension_numbers<[2], [1], [1], [2], [0, 0, 0, 1, 1, 2], [0], [0]>} : vector<2x8x8xbf16>, vector<2x8x16xbf16>, vector<2x8x16xf32> -> vector<2x8x16xf32>
    %91 = tpu.concatenate %42, %58, %74, %90 in 2 : vector<2x8x16xf32>, vector<2x8x16xf32>, vector<2x8x16xf32>, vector<2x8x16xf32> -> vector<2x8x64xf32>
    %92 = arith.truncf %91 : vector<2x8x64xf32> to vector<2x8x64xbf16>
    %93 = vector.shape_cast %92 : vector<2x8x64xbf16> to vector<16x64xbf16>
    %c0_38 = arith.constant 0 : index
    %c0_39 = arith.constant 0 : index
    %94 = vector.load %arg10[%c0_38, %c0_39] : memref<64x32xbf16, #tpu.memory_space<vmem>>, vector<64x32xbf16>
    %cst_40 = arith.constant dense<0.000000e+00> : vector<16x32xf32>
    %95 = tpu.matmul %93, %94, %cst_40 {dimension_numbers = #tpu.dot_dimension_numbers<[1], [0], [0], [1], [0, 0, 1, 1], [], []>} : vector<16x64xbf16>, vector<64x32xbf16>, vector<16x32xf32> -> vector<16x32xf32>
    %c0_41 = arith.constant 0 : index
    %c0_42 = arith.constant 0 : index
    %96 = vector.load %arg11[%c0_41, %c0_42] : memref<1x32xf32, #tpu.memory_space<vmem>>, vector<1x32xf32>
    %97 = vector.broadcast %96 : vector<1x32xf32> to vector<16x32xf32>
    %98 = arith.addf %95, %97 : vector<16x32xf32>
    %99 = vector.shape_cast %98 : vector<16x32xf32> to vector<2x8x32xf32>
    %c0_43 = arith.constant 0 : index
    %c0_44 = arith.constant 0 : index
    %c0_45 = arith.constant 0 : index
    %100 = vector.load %arg12[%c0_43, %c0_44, %c0_45] : memref<2x8x32xf32, #tpu.memory_space<vmem>>, vector<2x8x32xf32>
    tpu.vector_store %arg12[%c0_43, %c0_44, %c0_45], %99 {strides = array<i32>} : memref<2x8x32xf32, #tpu.memory_space<vmem>>, vector<2x8x32xf32>,
    return
  }
  func.func @transform_0(%arg0: i32) -> (i32, i32, i32) {
    %c0_i32 = arith.constant 0 : i32
    %c0_i32_0 = arith.constant 0 : i32
    %c0_i32_1 = arith.constant 0 : i32
    return %arg0, %c0_i32, %c0_i32_0 : i32, i32, i32
  }
  func.func @transform_1(%arg0: i32) -> (i32, i32, i32) {
    %c0_i32 = arith.constant 0 : i32
    %c0_i32_0 = arith.constant 0 : i32
    %c0_i32_1 = arith.constant 0 : i32
    return %arg0, %c0_i32, %c0_i32_0 : i32, i32, i32
  }
  func.func @transform_2(%arg0: i32) -> (i32, i32, i32) {
    %c0_i32 = arith.constant 0 : i32
    %c0_i32_0 = arith.constant 0 : i32
    %c0_i32_1 = arith.constant 0 : i32
    return %arg0, %c0_i32, %c0_i32_0 : i32, i32, i32
  }
  func.func @transform_3(%arg0: i32) -> (i32, i32) {
    %c0_i32 = arith.constant 0 : i32
    %c0_i32_0 = arith.constant 0 : i32
    %c0_i32_1 = arith.constant 0 : i32
    return %c0_i32, %c0_i32_0 : i32, i32
  }
  func.func @transform_4(%arg0: i32) -> (i32, i32) {
    %c0_i32 = arith.constant 0 : i32
    %c0_i32_0 = arith.constant 0 : i32
    %c0_i32_1 = arith.constant 0 : i32
    return %c0_i32, %c0_i32_0 : i32, i32
  }
  func.func @transform_5(%arg0: i32) -> (i32, i32) {
    %c0_i32 = arith.constant 0 : i32
    %c0_i32_0 = arith.constant 0 : i32
    %c0_i32_1 = arith.constant 0 : i32
    return %c0_i32, %c0_i32_0 : i32, i32
  }
  func.func @transform_6(%arg0: i32) -> (i32, i32) {
    %c0_i32 = arith.constant 0 : i32
    %c0_i32_0 = arith.constant 0 : i32
    %c0_i32_1 = arith.constant 0 : i32
    return %c0_i32, %c0_i32_0 : i32, i32
  }
  func.func @transform_7(%arg0: i32) -> (i32, i32) {
    %c0_i32 = arith.constant 0 : i32
    %c0_i32_0 = arith.constant 0 : i32
    %c0_i32_1 = arith.constant 0 : i32
    return %c0_i32, %c0_i32_0 : i32, i32
  }
  func.func @transform_8(%arg0: i32) -> (i32, i32) {
    %c0_i32 = arith.constant 0 : i32
    %c0_i32_0 = arith.constant 0 : i32
    %c0_i32_1 = arith.constant 0 : i32
    return %c0_i32, %c0_i32_0 : i32, i32
  }
  func.func @transform_9(%arg0: i32) -> (i32, i32) {
    %c0_i32 = arith.constant 0 : i32
    %c0_i32_0 = arith.constant 0 : i32
    %c0_i32_1 = arith.constant 0 : i32
    return %c0_i32, %c0_i32_0 : i32, i32
  }
  func.func @transform_10(%arg0: i32) -> (i32, i32) {
    %c0_i32 = arith.constant 0 : i32
    %c0_i32_0 = arith.constant 0 : i32
    %c0_i32_1 = arith.constant 0 : i32
    return %c0_i32, %c0_i32_0 : i32, i32
  }
  func.func @transform_11(%arg0: i32) -> (i32, i32, i32) {
    %c0_i32 = arith.constant 0 : i32
    %c0_i32_0 = arith.constant 0 : i32
    %c0_i32_1 = arith.constant 0 : i32
    return %arg0, %c0_i32, %c0_i32_0 : i32, i32, i32
  }
}

module attributes {stable_mosaic.version = 11 : i64} {
  func.func @_mha_kernel(%arg0: i32, %arg1: memref<2x8x32xbf16, #tpu.memory_space<vmem>>, %arg2: memref<2x8x32xbf16, #tpu.memory_space<vmem>>, %arg3: memref<2x8x32xbf16, #tpu.memory_space<vmem>>, %arg4: memref<32x64xbf16, #tpu.memory_space<vmem>>, %arg5: memref<1x64xf32, #tpu.memory_space<vmem>>, %arg6: memref<32x64xbf16, #tpu.memory_space<vmem>>, %arg7: memref<1x64xf32, #tpu.memory_space<vmem>>, %arg8: memref<32x64xbf16, #tpu.memory_space<vmem>>, %arg9: memref<1x64xf32, #tpu.memory_space<vmem>>, %arg10: memref<64x32xbf16, #tpu.memory_space<vmem>>, %arg11: memref<1x32xf32, #tpu.memory_space<vmem>>, %arg12: memref<2x8x32xf32, #tpu.memory_space<vmem>>) attributes {dimension_semantics = [#tpu.dimension_semantics<parallel>], iteration_bounds = array<i64: 1>, scalar_prefetch = 0 : i64, scratch_operands = 0 : i64, tpu.core_type = #tpu.core_type<tc>, window_params = [{transform_indices = @transform_0, window_bounds = array<i64: 2, 8, 32>}, {transform_indices = @transform_1, window_bounds = array<i64: 2, 8, 32>}, {transform_indices = @transform_2, window_bounds = array<i64: 2, 8, 32>}, {pipeline_mode = #tpu.pipeline_mode<synchronous>, transform_indices = @transform_3, window_bounds = array<i64: 32, 64>}, {pipeline_mode = #tpu.pipeline_mode<synchronous>, transform_indices = @transform_4, window_bounds = array<i64: 1, 64>}, {pipeline_mode = #tpu.pipeline_mode<synchronous>, transform_indices = @transform_5, window_bounds = array<i64: 32, 64>}, {pipeline_mode = #tpu.pipeline_mode<synchronous>, transform_indices = @transform_6, window_bounds = array<i64: 1, 64>}, {pipeline_mode = #tpu.pipeline_mode<synchronous>, transform_indices = @transform_7, window_bounds = array<i64: 32, 64>}, {pipeline_mode = #tpu.pipeline_mode<synchronous>, transform_indices = @transform_8, window_bounds = array<i64: 1, 64>}, {pipeline_mode = #tpu.pipeline_mode<synchronous>, transform_indices = @transform_9, window_bounds = array<i64: 64, 32>}, {pipeline_mode = #tpu.pipeline_mode<synchronous>, transform_indices = @transform_10, window_bounds = array<i64: 1, 32>}, {transform_indices = @transform_11, window_bounds = array<i64: 2, 8, 32>}]} {
    %c0 = arith.constant 0 : index
    %c0_0 = arith.constant 0 : index
    %c0_1 = arith.constant 0 : index
    %0 = vector.load %arg1[%c0, %c0_0, %c0_1] : memref<2x8x32xbf16, #tpu.memory_space<vmem>>, vector<2x8x32xbf16>
    %1 = vector.shape_cast %0 : vector<2x8x32xbf16> to vector<16x32xbf16>
    %c0_2 = arith.constant 0 : index
    %c0_3 = arith.constant 0 : index
    %c0_4 = arith.constant 0 : index
    %2 = vector.load %arg2[%c0_2, %c0_3, %c0_4] : memref<2x8x32xbf16, #tpu.memory_space<vmem>>, vector<2x8x32xbf16>
    %3 = vector.shape_cast %2 : vector<2x8x32xbf16> to vector<16x32xbf16>
    %c0_5 = arith.constant 0 : index
    %c0_6 = arith.constant 0 : index
    %c0_7 = arith.constant 0 : index
    %4 = vector.load %arg3[%c0_5, %c0_6, %c0_7] : memref<2x8x32xbf16, #tpu.memory_space<vmem>>, vector<2x8x32xbf16>
    %5 = vector.shape_cast %4 : vector<2x8x32xbf16> to vector<16x32xbf16>
    %c0_8 = arith.constant 0 : index
    %c0_9 = arith.constant 0 : index
    %6 = vector.load %arg4[%c0_8, %c0_9] : memref<32x64xbf16, #tpu.memory_space<vmem>>, vector<32x64xbf16>
    %cst = arith.constant dense<0.000000e+00> : vector<16x64xf32>
    %7 = tpu.matmul %1, %6, %cst {dimension_numbers = #tpu.dot_dimension_numbers<[1], [0], [0], [1], [0, 0, 1, 1], [], []>} : vector<16x32xbf16>, vector<32x64xbf16>, vector<16x64xf32> -> vector<16x64xf32>
    %c0_10 = arith.constant 0 : index
    %c0_11 = arith.constant 0 : index
    %8 = vector.load %arg5[%c0_10, %c0_11] : memref<1x64xf32, #tpu.memory_space<vmem>>, vector<1x64xf32>
    %9 = vector.broadcast %8 : vector<1x64xf32> to vector<16x64xf32>
    %10 = arith.addf %7, %9 : vector<16x64xf32>
    %c0_12 = arith.constant 0 : index
    %c0_13 = arith.constant 0 : index
    %11 = vector.load %arg6[%c0_12, %c0_13] : memref<32x64xbf16, #tpu.memory_space<vmem>>, vector<32x64xbf16>
    %cst_14 = arith.constant dense<0.000000e+00> : vector<16x64xf32>
    %12 = tpu.matmul %3, %11, %cst_14 {dimension_numbers = #tpu.dot_dimension_numbers<[1], [0], [0], [1], [0, 0, 1, 1], [], []>} : vector<16x32xbf16>, vector<32x64xbf16>, vector<16x64xf32> -> vector<16x64xf32>
    %c0_15 = arith.constant 0 : index
    %c0_16 = arith.constant 0 : index
    %13 = vector.load %arg7[%c0_15, %c0_16] : memref<1x64xf32, #tpu.memory_space<vmem>>, vector<1x64xf32>
    %14 = vector.broadcast %13 : vector<1x64xf32> to vector<16x64xf32>
    %15 = arith.addf %12, %14 : vector<16x64xf32>
    %c0_17 = arith.constant 0 : index
    %c0_18 = arith.constant 0 : index
    %16 = vector.load %arg8[%c0_17, %c0_18] : memref<32x64xbf16, #tpu.memory_space<vmem>>, vector<32x64xbf16>
    %cst_19 = arith.constant dense<0.000000e+00> : vector<16x64xf32>
    %17 = tpu.matmul %5, %16, %cst_19 {dimension_numbers = #tpu.dot_dimension_numbers<[1], [0], [0], [1], [0, 0, 1, 1], [], []>} : vector<16x32xbf16>, vector<32x64xbf16>, vector<16x64xf32> -> vector<16x64xf32>
    %c0_20 = arith.constant 0 : index
    %c0_21 = arith.constant 0 : index
    %18 = vector.load %arg9[%c0_20, %c0_21] : memref<1x64xf32, #tpu.memory_space<vmem>>, vector<1x64xf32>
    %19 = vector.broadcast %18 : vector<1x64xf32> to vector<16x64xf32>
    %20 = arith.addf %17, %19 : vector<16x64xf32>
    %21 = arith.truncf %10 : vector<16x64xf32> to vector<16x64xbf16>
    %22 = vector.shape_cast %21 : vector<16x64xbf16> to vector<2x8x64xbf16>
    %23 = arith.truncf %15 : vector<16x64xf32> to vector<16x64xbf16>
    %24 = vector.shape_cast %23 : vector<16x64xbf16> to vector<2x8x64xbf16>
    %25 = arith.truncf %20 : vector<16x64xf32> to vector<16x64xbf16>
    %26 = vector.shape_cast %25 : vector<16x64xbf16> to vector<2x8x64xbf16>
    %27 = vector.extract_strided_slice %26 {offsets = [0, 0, 0], sizes = [2, 8, 16], strides = [1, 1, 1]} : vector<2x8x64xbf16> to vector<2x8x16xbf16>
    %28 = vector.extract_strided_slice %22 {offsets = [0, 0, 0], sizes = [2, 8, 16], strides = [1, 1, 1]} : vector<2x8x64xbf16> to vector<2x8x16xbf16>
    %29 = vector.extract_strided_slice %24 {offsets = [0, 0, 0], sizes = [2, 8, 16], strides = [1, 1, 1]} : vector<2x8x64xbf16> to vector<2x8x16xbf16>
    %cst_22 = arith.constant dense<0.000000e+00> : vector<2x8x8xf32>
    %30 = tpu.matmul %27, %28, %cst_22 {dimension_numbers = #tpu.dot_dimension_numbers<[2], [2], [1], [1], [0, 0, 0, 1, 1, 1], [0], [0]>} : vector<2x8x16xbf16>, vector<2x8x16xbf16>, vector<2x8x8xf32> -> vector<2x8x8xf32>
    %cst_23 = arith.constant dense<0xFF800000> : vector<2x8xf32>
    %31 = vector.multi_reduction <maximumf>, %30, %cst_23 [2] : vector<2x8x8xf32> to vector<2x8xf32>
    %32 = vector.shape_cast %31 : vector<2x8xf32> to vector<2x8x1xf32>
    %33 = vector.broadcast %32 : vector<2x8x1xf32> to vector<2x8x8xf32>
    %34 = arith.subf %30, %33 : vector<2x8x8xf32>
    %35 = math.exp %34 : vector<2x8x8xf32>
    %cst_24 = arith.constant dense<0.000000e+00> : vector<2x8xf32>
    %36 = vector.multi_reduction <add>, %35, %cst_24 [2] : vector<2x8x8xf32> to vector<2x8xf32>
    %37 = vector.shape_cast %36 : vector<2x8xf32> to vector<2x8x1xf32>
    %38 = tpu.reciprocal %37 {approx = true} : vector<2x8x1xf32> -> vector<2x8x1xf32>
    %39 = vector.broadcast %38 : vector<2x8x1xf32> to vector<2x8x8xf32>
    %40 = arith.mulf %35, %39 : vector<2x8x8xf32>
    %41 = arith.truncf %40 : vector<2x8x8xf32> to vector<2x8x8xbf16>
    %cst_25 = arith.constant dense<0.000000e+00> : vector<2x8x16xf32>
    %42 = tpu.matmul %41, %29, %cst_25 {dimension_numbers = #tpu.dot_dimension_numbers<[2], [1], [1], [2], [0, 0, 0, 1, 1, 2], [0], [0]>} : vector<2x8x8xbf16>, vector<2x8x16xbf16>, vector<2x8x16xf32> -> vector<2x8x16xf32>
    %43 = vector.extract_strided_slice %26 {offsets = [0, 0, 16], sizes = [2, 8, 16], strides = [1, 1, 1]} : vector<2x8x64xbf16> to vector<2x8x16xbf16>
    %44 = vector.extract_strided_slice %22 {offsets = [0, 0, 16], sizes = [2, 8, 16], strides = [1, 1, 1]} : vector<2x8x64xbf16> to vector<2x8x16xbf16>
    %45 = vector.extract_strided_slice %24 {offsets = [0, 0, 16], sizes = [2, 8, 16], strides = [1, 1, 1]} : vector<2x8x64xbf16> to vector<2x8x16xbf16>
    %cst_26 = arith.constant dense<0.000000e+00> : vector<2x8x8xf32>
    %46 = tpu.matmul %43, %44, %cst_26 {dimension_numbers = #tpu.dot_dimension_numbers<[2], [2], [1], [1], [0, 0, 0, 1, 1, 1], [0], [0]>} : vector<2x8x16xbf16>, vector<2x8x16xbf16>, vector<2x8x8xf32> -> vector<2x8x8xf32>
    %cst_27 = arith.constant dense<0xFF800000> : vector<2x8xf32>
    %47 = vector.multi_reduction <maximumf>, %46, %cst_27 [2] : vector<2x8x8xf32> to vector<2x8xf32>
    %48 = vector.shape_cast %47 : vector<2x8xf32> to vector<2x8x1xf32>
    %49 = vector.broadcast %48 : vector<2x8x1xf32> to vector<2x8x8xf32>
    %50 = arith.subf %46, %49 : vector<2x8x8xf32>
    %51 = math.exp %50 : vector<2x8x8xf32>
    %cst_28 = arith.constant dense<0.000000e+00> : vector<2x8xf32>
    %52 = vector.multi_reduction <add>, %51, %cst_28 [2] : vector<2x8x8xf32> to vector<2x8xf32>
    %53 = vector.shape_cast %52 : vector<2x8xf32> to vector<2x8x1xf32>
    %54 = tpu.reciprocal %53 {approx = true} : vector<2x8x1xf32> -> vector<2x8x1xf32>
    %55 = vector.broadcast %54 : vector<2x8x1xf32> to vector<2x8x8xf32>
    %56 = arith.mulf %51, %55 : vector<2x8x8xf32>
    %57 = arith.truncf %56 : vector<2x8x8xf32> to vector<2x8x8xbf16>
    %cst_29 = arith.constant dense<0.000000e+00> : vector<2x8x16xf32>
    %58 = tpu.matmul %57, %45, %cst_29 {dimension_numbers = #tpu.dot_dimension_numbers<[2], [1], [1], [2], [0, 0, 0, 1, 1, 2], [0], [0]>} : vector<2x8x8xbf16>, vector<2x8x16xbf16>, vector<2x8x16xf32> -> vector<2x8x16xf32>
    %59 = vector.extract_strided_slice %26 {offsets = [0, 0, 32], sizes = [2, 8, 16], strides = [1, 1, 1]} : vector<2x8x64xbf16> to vector<2x8x16xbf16>
    %60 = vector.extract_strided_slice %22 {offsets = [0, 0, 32], sizes = [2, 8, 16], strides = [1, 1, 1]} : vector<2x8x64xbf16> to vector<2x8x16xbf16>
    %61 = vector.extract_strided_slice %24 {offsets = [0, 0, 32], sizes = [2, 8, 16], strides = [1, 1, 1]} : vector<2x8x64xbf16> to vector<2x8x16xbf16>
    %cst_30 = arith.constant dense<0.000000e+00> : vector<2x8x8xf32>
    %62 = tpu.matmul %59, %60, %cst_30 {dimension_numbers = #tpu.dot_dimension_numbers<[2], [2], [1], [1], [0, 0, 0, 1, 1, 1], [0], [0]>} : vector<2x8x16xbf16>, vector<2x8x16xbf16>, vector<2x8x8xf32> -> vector<2x8x8xf32>
    %cst_31 = arith.constant dense<0xFF800000> : vector<2x8xf32>
    %63 = vector.multi_reduction <maximumf>, %62, %cst_31 [2] : vector<2x8x8xf32> to vector<2x8xf32>
    %64 = vector.shape_cast %63 : vector<2x8xf32> to vector<2x8x1xf32>
    %65 = vector.broadcast %64 : vector<2x8x1xf32> to vector<2x8x8xf32>
    %66 = arith.subf %62, %65 : vector<2x8x8xf32>
    %67 = math.exp %66 : vector<2x8x8xf32>
    %cst_32 = arith.constant dense<0.000000e+00> : vector<2x8xf32>
    %68 = vector.multi_reduction <add>, %67, %cst_32 [2] : vector<2x8x8xf32> to vector<2x8xf32>
    %69 = vector.shape_cast %68 : vector<2x8xf32> to vector<2x8x1xf32>
    %70 = tpu.reciprocal %69 {approx = true} : vector<2x8x1xf32> -> vector<2x8x1xf32>
    %71 = vector.broadcast %70 : vector<2x8x1xf32> to vector<2x8x8xf32>
    %72 = arith.mulf %67, %71 : vector<2x8x8xf32>
    %73 = arith.truncf %72 : vector<2x8x8xf32> to vector<2x8x8xbf16>
    %cst_33 = arith.constant dense<0.000000e+00> : vector<2x8x16xf32>
    %74 = tpu.matmul %73, %61, %cst_33 {dimension_numbers = #tpu.dot_dimension_numbers<[2], [1], [1], [2], [0, 0, 0, 1, 1, 2], [0], [0]>} : vector<2x8x8xbf16>, vector<2x8x16xbf16>, vector<2x8x16xf32> -> vector<2x8x16xf32>
    %75 = vector.extract_strided_slice %26 {offsets = [0, 0, 48], sizes = [2, 8, 16], strides = [1, 1, 1]} : vector<2x8x64xbf16> to vector<2x8x16xbf16>
    %76 = vector.extract_strided_slice %22 {offsets = [0, 0, 48], sizes = [2, 8, 16], strides = [1, 1, 1]} : vector<2x8x64xbf16> to vector<2x8x16xbf16>
    %77 = vector.extract_strided_slice %24 {offsets = [0, 0, 48], sizes = [2, 8, 16], strides = [1, 1, 1]} : vector<2x8x64xbf16> to vector<2x8x16xbf16>
    %cst_34 = arith.constant dense<0.000000e+00> : vector<2x8x8xf32>
    %78 = tpu.matmul %75, %76, %cst_34 {dimension_numbers = #tpu.dot_dimension_numbers<[2], [2], [1], [1], [0, 0, 0, 1, 1, 1], [0], [0]>} : vector<2x8x16xbf16>, vector<2x8x16xbf16>, vector<2x8x8xf32> -> vector<2x8x8xf32>
    %cst_35 = arith.constant dense<0xFF800000> : vector<2x8xf32>
    %79 = vector.multi_reduction <maximumf>, %78, %cst_35 [2] : vector<2x8x8xf32> to vector<2x8xf32>
    %80 = vector.shape_cast %79 : vector<2x8xf32> to vector<2x8x1xf32>
    %81 = vector.broadcast %80 : vector<2x8x1xf32> to vector<2x8x8xf32>
    %82 = arith.subf %78, %81 : vector<2x8x8xf32>
    %83 = math.exp %82 : vector<2x8x8xf32>
    %cst_36 = arith.constant dense<0.000000e+00> : vector<2x8xf32>
    %84 = vector.multi_reduction <add>, %83, %cst_36 [2] : vector<2x8x8xf32> to vector<2x8xf32>
    %85 = vector.shape_cast %84 : vector<2x8xf32> to vector<2x8x1xf32>
    %86 = tpu.reciprocal %85 {approx = true} : vector<2x8x1xf32> -> vector<2x8x1xf32>
    %87 = vector.broadcast %86 : vector<2x8x1xf32> to vector<2x8x8xf32>
    %88 = arith.mulf %83, %87 : vector<2x8x8xf32>
    %89 = arith.truncf %88 : vector<2x8x8xf32> to vector<2x8x8xbf16>
    %cst_37 = arith.constant dense<0.000000e+00> : vector<2x8x16xf32>
    %90 = tpu.matmul %89, %77, %cst_37 {dimension_numbers = #tpu.dot_dimension_numbers<[2], [1], [1], [2], [0, 0, 0, 1, 1, 2], [0], [0]>} : vector<2x8x8xbf16>, vector<2x8x16xbf16>, vector<2x8x16xf32> -> vector<2x8x16xf32>
    %91 = tpu.concatenate %42, %58, %74, %90 in 2 : vector<2x8x16xf32>, vector<2x8x16xf32>, vector<2x8x16xf32>, vector<2x8x16xf32> -> vector<2x8x64xf32>
    %92 = arith.truncf %91 : vector<2x8x64xf32> to vector<2x8x64xbf16>
    %93 = vector.shape_cast %92 : vector<2x8x64xbf16> to vector<16x64xbf16>
    %c0_38 = arith.constant 0 : index
    %c0_39 = arith.constant 0 : index
    %94 = vector.load %arg10[%c0_38, %c0_39] : memref<64x32xbf16, #tpu.memory_space<vmem>>, vector<64x32xbf16>
    %cst_40 = arith.constant dense<0.000000e+00> : vector<16x32xf32>
    %95 = tpu.matmul %93, %94, %cst_40 {dimension_numbers = #tpu.dot_dimension_numbers<[1], [0], [0], [1], [0, 0, 1, 1], [], []>} : vector<16x64xbf16>, vector<64x32xbf16>, vector<16x32xf32> -> vector<16x32xf32>
    %c0_41 = arith.constant 0 : index
    %c0_42 = arith.constant 0 : index
    %96 = vector.load %arg11[%c0_41, %c0_42] : memref<1x32xf32, #tpu.memory_space<vmem>>, vector<1x32xf32>
    %97 = vector.broadcast %96 : vector<1x32xf32> to vector<16x32xf32>
    %98 = arith.addf %95, %97 : vector<16x32xf32>
    %99 = vector.shape_cast %98 : vector<16x32xf32> to vector<2x8x32xf32>
    %c0_43 = arith.constant 0 : index
    %c0_44 = arith.constant 0 : index
    %c0_45 = arith.constant 0 : index
    %100 = vector.load %arg12[%c0_43, %c0_44, %c0_45] : memref<2x8x32xf32, #tpu.memory_space<vmem>>, vector<2x8x32xf32>
    tpu.vector_store %arg12[%c0_43, %c0_44, %c0_45], %99 {strides = array<i32>} : memref<2x8x32xf32, #tpu.memory_space<vmem>>, vector<2x8x32xf32>,
    return
  }
  func.func @transform_0(%arg0: i32) -> (i32, i32, i32) {
    %c0_i32 = arith.constant 0 : i32
    %c0_i32_0 = arith.constant 0 : i32
    %c0_i32_1 = arith.constant 0 : i32
    return %arg0, %c0_i32, %c0_i32_0 : i32, i32, i32
  }
  func.func @transform_1(%arg0: i32) -> (i32, i32, i32) {
    %c0_i32 = arith.constant 0 : i32
    %c0_i32_0 = arith.constant 0 : i32
    %c0_i32_1 = arith.constant 0 : i32
    return %arg0, %c0_i32, %c0_i32_0 : i32, i32, i32
  }
  func.func @transform_2(%arg0: i32) -> (i32, i32, i32) {
    %c0_i32 = arith.constant 0 : i32
    %c0_i32_0 = arith.constant 0 : i32
    %c0_i32_1 = arith.constant 0 : i32
    return %arg0, %c0_i32, %c0_i32_0 : i32, i32, i32
  }
  func.func @transform_3(%arg0: i32) -> (i32, i32) {
    %c0_i32 = arith.constant 0 : i32
    %c0_i32_0 = arith.constant 0 : i32
    %c0_i32_1 = arith.constant 0 : i32
    return %c0_i32, %c0_i32_0 : i32, i32
  }
  func.func @transform_4(%arg0: i32) -> (i32, i32) {
    %c0_i32 = arith.constant 0 : i32
    %c0_i32_0 = arith.constant 0 : i32
    %c0_i32_1 = arith.constant 0 : i32
    return %c0_i32, %c0_i32_0 : i32, i32
  }
  func.func @transform_5(%arg0: i32) -> (i32, i32) {
    %c0_i32 = arith.constant 0 : i32
    %c0_i32_0 = arith.constant 0 : i32
    %c0_i32_1 = arith.constant 0 : i32
    return %c0_i32, %c0_i32_0 : i32, i32
  }
  func.func @transform_6(%arg0: i32) -> (i32, i32) {
    %c0_i32 = arith.constant 0 : i32
    %c0_i32_0 = arith.constant 0 : i32
    %c0_i32_1 = arith.constant 0 : i32
    return %c0_i32, %c0_i32_0 : i32, i32
  }
  func.func @transform_7(%arg0: i32) -> (i32, i32) {
    %c0_i32 = arith.constant 0 : i32
    %c0_i32_0 = arith.constant 0 : i32
    %c0_i32_1 = arith.constant 0 : i32
    return %c0_i32, %c0_i32_0 : i32, i32
  }
  func.func @transform_8(%arg0: i32) -> (i32, i32) {
    %c0_i32 = arith.constant 0 : i32
    %c0_i32_0 = arith.constant 0 : i32
    %c0_i32_1 = arith.constant 0 : i32
    return %c0_i32, %c0_i32_0 : i32, i32
  }
  func.func @transform_9(%arg0: i32) -> (i32, i32) {
    %c0_i32 = arith.constant 0 : i32
    %c0_i32_0 = arith.constant 0 : i32
    %c0_i32_1 = arith.constant 0 : i32
    return %c0_i32, %c0_i32_0 : i32, i32
  }
  func.func @transform_10(%arg0: i32) -> (i32, i32) {
    %c0_i32 = arith.constant 0 : i32
    %c0_i32_0 = arith.constant 0 : i32
    %c0_i32_1 = arith.constant 0 : i32
    return %c0_i32, %c0_i32_0 : i32, i32
  }
  func.func @transform_11(%arg0: i32) -> (i32, i32, i32) {
    %c0_i32 = arith.constant 0 : i32
    %c0_i32_0 = arith.constant 0 : i32
    %c0_i32_1 = arith.constant 0 : i32
    return %arg0, %c0_i32, %c0_i32_0 : i32, i32, i32
  }
}

</mosaic_0001>

<bundles_post_ra>
// kernel: tpu_custom_call.1
= control target key start
LH: loop header
LB: loop body
LE: loop exit
PB: predicated region body
PF: predicated region fallthrough
CT: control target
= control target key end

     0   :  { %16 = vsyncpa [#allocation3], 0  ;;  %s2108_s0 = inlined_call_operand.hbm [shape: bf16[2,8,32], index: 0, kind: input, shape index: {}]   ;;  %s2109_s1 = inlined_call_operand.hbm [shape: bf16[2,8,32], index: 1, kind: input, shape index: {}]   ;;  %s2110_s2 = inlined_call_operand.hbm [shape: bf16[2,8,32], index: 2, kind: input, shape index: {}]   ;;  %s2111_s3 = inlined_call_operand.vmem [shape: bf16[32,64], index: 3, kind: input, shape index: {}]   ;;  %s2112_s4 = inlined_call_operand.vmem [shape: f32[1,64], index: 4, kind: input, shape index: {}]   ;;  %s2113_s5 = inlined_call_operand.vmem [shape: bf16[32,64], index: 5, kind: input, shape index: {}]   ;;  %s2114_s6 = inlined_call_operand.vmem [shape: f32[1,64], index: 6, kind: input, shape index: {}]   ;;  %s2115_s7 = inlined_call_operand.vmem [shape: bf16[32,64], index: 7, kind: input, shape index: {}]   ;;  %s2116_s8 = inlined_call_operand.vmem [shape: f32[1,64], index: 8, kind: input, shape index: {}]   ;;  %s2117_s9 = inlined_call_operand.vmem [shape: bf16[64,32], index: 9, kind: input, shape index: {}]   ;;  %s2118_s10 = inlined_call_operand.vmem [shape: f32[1,32], index: 10, kind: input, shape index: {}]   ;;  %s2119_s11 = inlined_call_operand.hbm [shape: f32[2,8,32], index: 11, kind: output, shape index: {}]  }
   0x1   :  { %17 = vsyncpa [#allocation6], 0 }
   0x2   :  { %18 = vsyncpa [#allocation4], 0  ;;  %s1734_s17 = smov [#allocation5]   ;;  %s1735_s19 = smov [#allocation2]  }
   0x3   :  { %s36_s18 = sshll.u32 %s1734_s17, 4  ;;  %s24_s20 = sshll.u32 %s1735_s19, 4  ;;  %s37_s18 = int_to_ptr.vmem [resolvable:$true] %s36_s18  ;;  %s1810_s20 = int_to_ptr.vmem [resolvable:$true] %s24_s20 }
   0x4   :  { %s1640_s23 = scalar_lea.hbm %s2109_s1, 128 }
   0x5   :  { %p1641_p0 = scmp.ne.s32.totalorder %s2109_s1, %s1640_s23  ;;  %p1644_p1 = scmp.lt.u32.totalorder %s1640_s23, %s2109_s1 }
   0x7   :  { %p1646_p2 = pnand %p1644_p1, %p1641_p0 }
   0x9   :  { %1649 = shalt.err (!%p1646_p2)
}
   0xa   :  { %s1650_s28 = scalar_lea.vmem %s37_s18, 128  ;;  %p1655_p4 = scmp.lt.s32.totalorder %s37_s18, %s37_s18 }
   0xb   :  { %p1651_p3 = scmp.ne.s32.totalorder %s37_s18, %s1650_s28  ;;  %p1656_p5 = scmp.lt.s32.totalorder %s1650_s28, %s1650_s28 }
   0xd   :  { %p1657_p6 = por %p1656_p5, %p1655_p4 }
   0xf   :  { %p1658_p7 = pnand %p1657_p6, %p1651_p3 }
  0x11   :  { %1661 = shalt.err (!%p1658_p7)
}
  0x12   :  { %s1736_s29 = smov 64   ;;  %s1737_s30 = smov 4  }
  0x13   :  { %42 = dma.hbm_to_vmem [thread:$0]  %s2109_s1, 128, %s37_s18, [#allocation6], %s1736_s29, %s1736_s29, %s1737_s30  }
  0x14   :  { %s1662_s16 = scalar_lea.hbm %s2108_s0, 128 }
  0x15   :  { %p1663_p8 = scmp.ne.s32.totalorder %s2108_s0, %s1662_s16  ;;  %p1666_p9 = scmp.lt.u32.totalorder %s1662_s16, %s2108_s0 }
  0x17   :  { %p1668_p10 = pnand %p1666_p9, %p1663_p8 }
  0x19   :  { %1671 = shalt.err (!%p1668_p10)
}
  0x1a   :  { %s1672_s23 = scalar_lea.vmem %s1810_s20, 128  ;;  %p1677_p12 = scmp.lt.s32.totalorder %s1810_s20, %s1810_s20 }
  0x1b   :  { %p1673_p11 = scmp.ne.s32.totalorder %s1810_s20, %s1672_s23  ;;  %p1678_p13 = scmp.lt.s32.totalorder %s1672_s23, %s1672_s23 }
  0x1d   :  { %p1679_p0 = por %p1678_p13, %p1677_p12 }
  0x1f   :  { %p1680_p1 = pnand %p1679_p0, %p1673_p11 }
  0x21   :  { %1683 = shalt.err (!%p1680_p1)
}
  0x22   :  { %30 = dma.hbm_to_vmem [thread:$0]  %s2108_s0, 128, %s1810_s20, [#allocation3], %s1736_s29, %s1736_s29, %s1737_s30  }
  0x23   :  { %s1738_s24 = smov [#allocation7]   ;;  %s1684_s28 = scalar_lea.hbm %s2110_s2, 128 }
  0x24   :  { %s48_s25 = sshll.u32 %s1738_s24, 4  ;;  %p1685_p2 = scmp.ne.s32.totalorder %s2110_s2, %s1684_s28  ;;  %s49_s25 = int_to_ptr.vmem [resolvable:$true] %s48_s25 }
  0x25   :  { %p1688_p3 = scmp.lt.u32.totalorder %s1684_s28, %s2110_s2 }
  0x27   :  { %p1690_p4 = pnand %p1688_p3, %p1685_p2 }
  0x29   :  { %1693 = shalt.err (!%p1690_p4)
}
  0x2a   :  { %s1694_s16 = scalar_lea.vmem %s49_s25, 128  ;;  %p1699_p6 = scmp.lt.s32.totalorder %s49_s25, %s49_s25 }
  0x2b   :  { %p1695_p5 = scmp.ne.s32.totalorder %s49_s25, %s1694_s16  ;;  %p1700_p7 = scmp.lt.s32.totalorder %s1694_s16, %s1694_s16 }
  0x2d   :  { %p1701_p8 = por %p1700_p7, %p1699_p6 }
  0x2f   :  { %p1702_p9 = pnand %p1701_p8, %p1695_p5 }
  0x31   :  { %1705 = shalt.err (!%p1702_p9)
}
  0x32   :  { %54 = dma.hbm_to_vmem [thread:$0]  %s2110_s2, 128, %s49_s25, [#allocation6], %s1736_s29, %s1736_s29, %s1737_s30  }
  0x33   :  { %1728 = dma.done.wait [#allocation3], 128  }
  0x34   :  { %1729 = vsyncadd [#allocation3], 4294967168 }
  0x35   :  { %1730 = dma.done.wait [#allocation6], 256  }
  0x36   :  { %1731 = vsyncadd [#allocation6], 4294967040  ;;  %v1739_v0 = vmov 0.0   ;;  %vm1740_vm0 = vmmov 0   ;;  %v1595_v1 = vld [vmem:[%s2111_s3] sm:$0xff]   ;;  %v1596_v2 = vld [vmem:[%s2111_s3 + $0x8] sm:$0xff]  }
  0x37   :  { %1432 = vmatprep.subr.bf16.mxu0 %v1739_v0  ;;  %1436 = vmatprep.mubr.msk.bf16.mxu0 %vm1740_vm0, %v1739_v0  ;;  %v1597_v3 = vld [vmem:[#allocation2] sm:$0xff]   ;;  %vm115_vm1 = vcmask 261120   ;;  %v1599_v6 = vld [vmem:[%s2115_s7 + $0x8] sm:$0xff]   ;;  %v1600_v8 = vld [vmem:[#allocation7] sm:$0xff]   ;;  %vm322_vm2 = vcmask 130048   ;;  %vm443_vm3 = vcmask 1043456  }
  0x38   :  { %1440 = vmatprep.subr.bf16.mxu1 %v1739_v0  ;;  %1444 = vmatprep.mubr.msk.bf16.mxu1 %vm1740_vm0, %v1739_v0  ;;  %v1598_v4 = vld [vmem:[%s2115_s7] sm:$0xff]   ;;  %v1602_v7 = vld [vmem:[%s2113_s5 + $0x8] sm:$0xff]   ;;  %vm415_vm4 = vcmask 64512   ;;  %s1743_s28 = smov 80   ;;  %s1744_s12 = smov 16   ;;  %vm1221_vm5 = vcmask 392192  }
  0x39   :  { %1433 = vmatpush3.bf16.msra.mxu0 %v1595_v1  ;;  %v1601_v5 = vld [vmem:[%s2113_s5] sm:$0xff]   ;;  %v1603_v9 = vld [vmem:[#allocation5] sm:$0xff]   ;;  %s1745_s13 = smov 32   ;;  %s1746_s29 = smov 48   ;;  %vm1270_vm6 = vcmask 523264  }
  0x3a   :  { %1434 = vmatprep.subr.bf16.mxu0 %v1739_v0  ;;  %1441 = vmatpush3.bf16.msra.mxu1 %v1601_v5  ;;  %v1335_v10 = vld [vmem:[%s2112_s4] ss:$0 sm:$0xff]  ;;  %s1741_s4 = smov 112   ;;  %s1747_s21 = smov [#allocation8]  }
  0x3b   :  { %1442 = vmatprep.subr.bf16.mxu1 %v1739_v0  ;;  %v1345_v20 = vld [vmem:[%s2116_s8] ss:$0 sm:$0xff]  ;;  %s1322_s22 = sshll.u32 %s1747_s21, 4  ;;  %s1323_s22 = int_to_ptr.vmem [resolvable:$true] %s1322_s22 }
  0x3c   :  { %v1340_v30 = vld [vmem:[%s2114_s6] ss:$0 sm:$0xff]  ;;  %s1742_s6 = smov 96   ;;  %s1706_s23 = scalar_lea.vmem %s1323_s22, 256 }
  0x3d   :  { %1435 = vmatpush3.bf16.msra.mxu0 %v1596_v2  ;;  %p1707_p10 = scmp.ne.s32.totalorder %s1323_s22, %s1706_s23  ;;  %p1711_p11 = scmp.lt.s32.totalorder %s1323_s22, %s1323_s22 }
  0x3e   :  { %1448 = vmatprep.subr.bf16.mxu0 %v1739_v0  ;;  %1443 = vmatpush3.bf16.msra.mxu1 %v1602_v7  ;;  %p1712_p12 = scmp.lt.s32.totalorder %s1706_s23, %s1706_s23 }
  0x3f   :  { %1456 = vmatprep.subr.bf16.mxu1 %v1739_v0 }
  0x40   :  { %1437 = vmatmul.mubr.msk.bf16.vlgmr.msra.gmra.mrb[0].mxu0 %vm115_vm1, %v1597_v3  ;;  %p1713_p13 = por %p1712_p12, %p1711_p11 }
  0x41   :  { %1449 = vmatpush3.bf16.msra.mxu0 %v1598_v4  ;;  %1452 = vmatprep.mubr.msk.bf16.mxu0 %vm1740_vm0, %v1739_v0 }
  0x42   :  { %1450 = vmatprep.subr.bf16.mxu0 %v1739_v0  ;;  %1445 = vmatmul.mubr.msk.bf16.vlgmr.msra.gmra.mrb[0].mxu1 %vm115_vm1, %v1603_v9  ;;  %p1714_p0 = pnand %p1713_p13, %p1707_p10 }
  0x43   :  { %1458 = vmatprep.mubr.msk.bf16.mxu1 %vm1740_vm0, %v1739_v0 }
  0x45   :  { %1451 = vmatpush3.bf16.msra.mxu0 %v1599_v6 }
  0x46   :  { %1462 = vmatprep.subr.bf16.mxu0 %v1739_v0 }
  0x48   :  { %1453 = vmatmul.mubr.msk.bf16.vlgmr.msra.gmra.mrb[4].mxu0 %vm115_vm1, %v1600_v8 }
  0x49   :  { %1464 = vmatprep.mubr.msk.bf16.mxu0 %vm1740_vm0, %v1739_v0 }
 0x113   :  { %v153_v11 = vpop.f32.mrb[0].mxu0 }
 0x114   :  { %v154_v12 = vadd.f32 %v1335_v10, %v153_v11  ;;  %v1438_v13 = vpop.f32.mrb[1].mxu0 }
 0x115   :  { %v156_v14 = vpop.f32.mrb[2].mxu0  ;;  %v225_v31 = vpop.f32.mrb[0].mxu1 }
 0x116   :  { %v1904_v15 = vpack.c.bf16 %v154_v12, %v154_v12  ;;  %v157_v16 = vadd.f32 %v1335_v10, %v156_v14  ;;  %v1439_v17 = vpop.f32.mrb[3].mxu0  ;;  %v226_v32 = vadd.f32 %v1340_v30, %v225_v31  ;;  %v1446_v33 = vpop.f32.mrb[1].mxu1 }
 0x117   :  { %v228_v34 = vpop.f32.mrb[2].mxu1 }
 0x118   :  { %v1906_v18 = vpack.c.bf16 %v157_v16, %v157_v16  ;;  %v327_v19 = vsel %vm322_vm2, %v1904_v15, 0  ;;  %v1934_v35 = vpack.c.bf16 %v226_v32, %v226_v32  ;;  %v229_v36 = vadd.f32 %v1340_v30, %v228_v34  ;;  %v1447_v37 = vpop.f32.mrb[3].mxu1 }
 0x119   :  { %1457 = vmatpush3.bf16.xpose.msra.mxu1 %v327_v19 }
 0x11a   :  { %585 = vrot.lane.b32.xlu1 %v1906_v18, %s1741_s4  ;;  %v373_v21 = vsel %vm322_vm2, %v1906_v18, 0  ;;  %1468 = vmatprep.subr.bf16.mxu1 %v1739_v0  ;;  %v1936_v38 = vpack.c.bf16 %v229_v36, %v229_v36  ;;  %v445_v39 = vsel %vm443_vm3, %v1934_v35, 0 }
 0x11b   :  { %v297_v22 = vpop.f32.mrb[4].mxu0  ;;  %1463 = vmatpush3.bf16.xpose.msra.mxu0 %v373_v21 }
 0x11c   :  { %v298_v23 = vadd.f32 %v1345_v20, %v297_v22  ;;  %v1454_v24 = vpop.f32.mrb[5].mxu0  ;;  %1474 = vmatprep.subr.bf16.mxu0 %v1739_v0  ;;  %v491_v40 = vsel %vm443_vm3, %v1936_v38, 0 }
 0x11d   :  { %v300_v25 = vpop.f32.mrb[6].mxu0 }
 0x11e   :  { %v1919_v26 = vpack.c.bf16 %v298_v23, %v298_v23  ;;  %v301_v27 = vadd.f32 %v1345_v20, %v300_v25  ;;  %v1455_v28 = vpop.f32.mrb[7].mxu0 }
 0x120   :  { %v1921_v29 = vpack.c.bf16 %v301_v27, %v301_v27  ;;  %1459 = vmatmul.mubr.msk.bf16.vlgmr.msra.gmra.mrb[4].mxu1 %vm322_vm2, %v1919_v26 }
 0x121   :  { %1470 = vmatprep.mubr.msk.bf16.mxu1 %vm1740_vm0, %v1739_v0  ;;  %1469 = vmatpush3.bf16.msra.mxu1 %v445_v39 }
 0x122   :  { %1465 = vmatmul.mubr.msk.bf16.vlgmr.msra.gmra.mrb[8].mxu0 %vm322_vm2, %v1921_v29  ;;  %1480 = vmatprep.subr.bf16.mxu1 %v1739_v0 }
 0x123   :  { %1476 = vmatprep.mubr.msk.bf16.mxu0 %vm1740_vm0, %v1739_v0  ;;  %1475 = vmatpush3.bf16.msra.mxu0 %v491_v40 }
 0x124   :  { %1486 = vmatprep.subr.bf16.mxu0 %v1739_v0 }
 0x18c   :  { %v586_v61 = vpop.permute.xlu1 %585 }
 0x18d   :  { %v591_v9 = vsel %vm322_vm2, %v586_v61, 0 }
 0x1f3   :  { %v363_v41 = vpop.f32.mrb[4].mxu1 }
 0x1f4   :  { %v1460_v42 = vpop.f32.mrb[5].mxu1  ;;  %v416_v43 = vsel %vm415_vm4, %v363_v41, -inf }
 0x1f5   :  { %417 = vmax.xlane.f32.xlu0 %v416_v43  ;;  %v366_v44 = vpop.f32.mrb[6].mxu1  ;;  %v409_v45 = vpop.f32.mrb[8].mxu0 }
 0x1f6   :  { %v1461_v46 = vpop.f32.mrb[7].mxu1  ;;  %v1466_v47 = vpop.f32.mrb[9].mxu0  ;;  %v419_v50 = vsel %vm415_vm4, %v409_v45, -inf }
 0x1f7   :  { %v412_v48 = vpop.f32.mrb[10].mxu0 }
 0x1f8   :  { %v1467_v49 = vpop.f32.mrb[11].mxu0 }
 0x1f9   :  { %420 = vmax.xlane.f32.xlu0 %v419_v50 }
 0x20f   :  { %535 = vrot.lane.b32.xlu0 %v1904_v15, %s1741_s4 }
 0x282   :  { %v418_v51 = vpop.xlane.xlu0 %417 }
 0x283   :  { %v422_v52 = vsub.f32 %v363_v41, %v418_v51 }
 0x285   :  { %v424_v53 = vmul.f32 1.442695, %v422_v52 }
 0x286   :  { %v421_v54 = vpop.xlane.xlu0 %420 }
 0x287   :  { %1608 = vpow2.f32 %v424_v53  ;;  %v423_v55 = vsub.f32 %v409_v45, %v421_v54 }
 0x289   :  { %v426_v56 = vmul.f32 1.442695, %v423_v55 }
 0x28a   :  { %v536_v3 = vpop.permute.xlu0 %535 }
 0x28b   :  { %1610 = vpow2.f32 %v426_v56  ;;  %v541_v6 = vsel %vm322_vm2, %v536_v3, 0 }
 0x291   :  { %v1609_v57 = vpop.eup %1608 }
 0x292   :  { %v428_v58 = vsel %vm415_vm4, %v1609_v57, 0.0 }
 0x293   :  { %429 = vadd.xlane.f32.xlu1 %v428_v58 }
 0x295   :  { %v1611_v59 = vpop.eup %1610 }
 0x296   :  { %v431_v60 = vsel %vm415_vm4, %v1611_v59, 0.0 }
 0x297   :  { %432 = vadd.xlane.f32.xlu1 %v431_v60 }
 0x2a8   :  { %533 = vrot.lane.b32.xlu1 %v1919_v26, %s1741_s4 }
 0x2ac   :  { %583 = vrot.lane.b32.xlu1 %v1921_v29, %s1741_s4 }
 0x320   :  { %v430_v62 = vpop.xlane.xlu1 %429 }
 0x321   :  { %1612 = vrcp.f32 %v430_v62 }
 0x324   :  { %v433_v63 = vpop.xlane.xlu1 %432 }
 0x325   :  { %1614 = vrcp.f32 %v433_v63 }
 0x328   :  { %v534_v10 = vpop.permute.xlu1 %533 }
 0x32b   :  { %v1613_v1 = vpop.eup %1612 }
 0x32c   :  { %v436_v2 = vmul.f32 %v1613_v1, %v1609_v57  ;;  %v584_v11 = vpop.permute.xlu1 %583 }
 0x32e   :  { %v438_v4 = vpack.c.bf16 %v436_v2, %v436_v2 }
 0x32f   :  { %v1615_v5 = vpop.eup %1614 }
 0x330   :  { %v437_v7 = vmul.f32 %v1615_v5, %v1611_v59  ;;  %1471 = vmatmul.mubr.msk.bf16.vlgmr.msra.gmra.mrb[8].mxu1 %vm415_vm4, %v438_v4 }
 0x331   :  { %1481 = vmatpush3.bf16.xpose.msra.mxu1 %v541_v6  ;;  %1482 = vmatprep.mubr.msk.bf16.mxu1 %vm1740_vm0, %v1739_v0 }
 0x332   :  { %v439_v8 = vpack.c.bf16 %v437_v7, %v437_v7  ;;  %1492 = vmatprep.subr.bf16.mxu1 %v1739_v0 }
 0x334   :  { %1477 = vmatmul.mubr.msk.bf16.vlgmr.msra.gmra.mrb[12].mxu0 %vm415_vm4, %v439_v8 }
 0x335   :  { %1487 = vmatpush3.bf16.xpose.msra.mxu0 %v591_v9  ;;  %1488 = vmatprep.mubr.msk.bf16.mxu0 %vm1740_vm0, %v1739_v0 }
 0x336   :  { %1498 = vmatprep.subr.bf16.mxu0 %v1739_v0 }
 0x338   :  { %1483 = vmatmul.mubr.msk.bf16.vlgmr.msra.gmra.mrb[12].mxu1 %vm322_vm2, %v534_v10 }
 0x339   :  { %1494 = vmatprep.mubr.msk.bf16.mxu1 %vm1740_vm0, %v1739_v0 }
 0x33c   :  { %1489 = vmatmul.mubr.msk.bf16.vlgmr.msra.gmra.mrb[16].mxu0 %vm322_vm2, %v584_v11 }
 0x33d   :  { %1500 = vmatprep.mubr.msk.bf16.mxu0 %vm1740_vm0, %v1739_v0 }
 0x403   :  { %v1970_v12 = vpop.f32.mrb[8].mxu1 }
 0x404   :  { %v1472_v13 = vpop.f32.mrb[9].mxu1 }
 0x405   :  { %v484_v14 = vpop.f32.mrb[10].mxu1 }
 0x406   :  { %v1473_v16 = vpop.f32.mrb[11].mxu1 }
 0x407   :  { %v1972_v17 = vpop.f32.mrb[12].mxu0 }
 0x408   :  { %v1478_v19 = vpop.f32.mrb[13].mxu0 }
 0x409   :  { %v530_v20 = vpop.f32.mrb[14].mxu0 }
 0x40a   :  { %v1479_v21 = vpop.f32.mrb[15].mxu0 }
 0x40b   :  { %v577_v22 = vpop.f32.mrb[12].mxu1 }
 0x40c   :  { %v1484_v23 = vpop.f32.mrb[13].mxu1  ;;  %v633_v24 = vsel %vm415_vm4, %v577_v22, -inf }
 0x40d   :  { %634 = vmax.xlane.f32.xlu0 %v633_v24  ;;  %v580_v25 = vpop.f32.mrb[14].mxu1 }
 0x40e   :  { %v1485_v27 = vpop.f32.mrb[15].mxu1 }
 0x40f   :  { %v627_v28 = vpop.f32.mrb[16].mxu0 }
 0x410   :  { %v1490_v30 = vpop.f32.mrb[17].mxu0  ;;  %v636_v31 = vsel %vm415_vm4, %v627_v28, -inf }
 0x411   :  { %637 = vmax.xlane.f32.xlu1 %v636_v31  ;;  %v630_v32 = vpop.f32.mrb[18].mxu0 }
 0x412   :  { %v1491_v33 = vpop.f32.mrb[19].mxu0 }
 0x422   :  { %705 = vrot.lane.b32.xlu1 %v1936_v38, %s1741_s4 }
 0x426   :  { %755 = vrot.lane.b32.xlu1 %v1904_v15, %s1742_s6 }
 0x42a   :  { %805 = vrot.lane.b32.xlu1 %v1906_v18, %s1742_s6 }
 0x42e   :  { %803 = vrot.lane.b32.xlu1 %v1921_v29, %s1742_s6 }
 0x49a   :  { %v635_v34 = vpop.xlane.xlu0 %634 }
 0x49b   :  { %v639_v36 = vsub.f32 %v577_v22, %v635_v34 }
 0x49d   :  { %v641_v37 = vmul.f32 1.442695, %v639_v36 }
 0x49e   :  { %v638_v39 = vpop.xlane.xlu1 %637 }
 0x49f   :  { %1616 = vpow2.f32 %v641_v37  ;;  %v640_v40 = vsub.f32 %v627_v28, %v638_v39 }
 0x4a1   :  { %v643_v41 = vmul.f32 1.442695, %v640_v40 }
 0x4a2   :  { %v706_v42 = vpop.permute.xlu1 %705 }
 0x4a3   :  { %1618 = vpow2.f32 %v643_v41  ;;  %v711_v43 = vsel %vm443_vm3, %v706_v42, 0 }
 0x4a4   :  { %1499 = vmatpush3.bf16.msra.mxu0 %v711_v43 }
 0x4a5   :  { %1510 = vmatprep.subr.bf16.mxu0 %v1739_v0 }
 0x4a6   :  { %v756_v53 = vpop.permute.xlu1 %755 }
 0x4a7   :  { %v761_v59 = vsel %vm322_vm2, %v756_v53, 0 }
 0x4a9   :  { %v1617_v44 = vpop.eup %1616 }
 0x4aa   :  { %v645_v45 = vsel %vm415_vm4, %v1617_v44, 0.0  ;;  %v806_v58 = vpop.permute.xlu1 %805 }
 0x4ab   :  { %646 = vadd.xlane.f32.xlu0 %v645_v45  ;;  %v811_v61 = vsel %vm322_vm2, %v806_v58, 0 }
 0x4ad   :  { %v1619_v46 = vpop.eup %1618 }
 0x4ae   :  { %v648_v47 = vsel %vm415_vm4, %v1619_v46, 0.0  ;;  %v804_v63 = vpop.permute.xlu1 %803 }
 0x4af   :  { %649 = vadd.xlane.f32.xlu0 %v648_v47 }
 0x4c5   :  { %657 = vrot.lane.b32.xlu0 %v1934_v35, %s1741_s4 }
 0x4c9   :  { %753 = vrot.lane.b32.xlu0 %v1919_v26, %s1742_s6 }
 0x538   :  { %v647_v48 = vpop.xlane.xlu0 %646 }
 0x539   :  { %1620 = vrcp.f32 %v647_v48 }
 0x53c   :  { %v650_v49 = vpop.xlane.xlu0 %649 }
 0x53d   :  { %1622 = vrcp.f32 %v650_v49 }
 0x540   :  { %v658_v50 = vpop.permute.xlu0 %657 }
 0x541   :  { %v663_v51 = vsel %vm443_vm3, %v658_v50, 0 }
 0x542   :  { %1493 = vmatpush3.bf16.msra.mxu1 %v663_v51 }
 0x543   :  { %v1621_v52 = vpop.eup %1620  ;;  %1504 = vmatprep.subr.bf16.mxu1 %v1739_v0 }
 0x544   :  { %v653_v54 = vmul.f32 %v1621_v52, %v1617_v44  ;;  %v754_v62 = vpop.permute.xlu0 %753 }
 0x546   :  { %v655_v55 = vpack.c.bf16 %v653_v54, %v653_v54 }
 0x547   :  { %v1623_v56 = vpop.eup %1622 }
 0x548   :  { %v654_v57 = vmul.f32 %v1623_v56, %v1619_v46  ;;  %1495 = vmatmul.mubr.msk.bf16.vlgmr.msra.gmra.mrb[16].mxu1 %vm415_vm4, %v655_v55 }
 0x549   :  { %1506 = vmatprep.mubr.msk.bf16.mxu1 %vm1740_vm0, %v1739_v0 }
 0x54a   :  { %v656_v60 = vpack.c.bf16 %v654_v57, %v654_v57 }
 0x54b   :  { %1505 = vmatpush3.bf16.xpose.msra.mxu1 %v761_v59 }
 0x54c   :  { %1501 = vmatmul.mubr.msk.bf16.vlgmr.msra.gmra.mrb[20].mxu0 %vm415_vm4, %v656_v60  ;;  %1516 = vmatprep.subr.bf16.mxu1 %v1739_v0 }
 0x54d   :  { %1511 = vmatpush3.bf16.xpose.msra.mxu0 %v811_v61  ;;  %1512 = vmatprep.mubr.msk.bf16.mxu0 %vm1740_vm0, %v1739_v0 }
 0x54e   :  { %1522 = vmatprep.subr.bf16.mxu0 %v1739_v0 }
 0x552   :  { %1507 = vmatmul.mubr.msk.bf16.vlgmr.msra.gmra.mrb[20].mxu1 %vm322_vm2, %v754_v62 }
 0x553   :  { %1518 = vmatprep.mubr.msk.bf16.mxu1 %vm1740_vm0, %v1739_v0 }
 0x554   :  { %1513 = vmatmul.mubr.msk.bf16.vlgmr.msra.gmra.mrb[24].mxu0 %vm322_vm2, %v804_v63 }
 0x555   :  { %1524 = vmatprep.mubr.msk.bf16.mxu0 %vm1740_vm0, %v1739_v0 }
 0x61b   :  { %v2010_v1 = vpop.f32.mrb[16].mxu1 }
 0x61c   :  { %v1496_v2 = vpop.f32.mrb[17].mxu1 }
 0x61d   :  { %v702_v3 = vpop.f32.mrb[18].mxu1 }
 0x61e   :  { %v1497_v4 = vpop.f32.mrb[19].mxu1 }
 0x61f   :  { %v2012_v5 = vpop.f32.mrb[20].mxu0 }
 0x620   :  { %v1580_v6 = vpack.i.bf16 %v2012_v5, %v2010_v1  ;;  %v1502_v7 = vpop.f32.mrb[21].mxu0 }
 0x621   :  { %v750_v8 = vpop.f32.mrb[22].mxu0 }
 0x622   :  { %v1503_v9 = vpop.f32.mrb[23].mxu0 }
 0x625   :  { %v797_v10 = vpop.f32.mrb[20].mxu1 }
 0x626   :  { %v1508_v11 = vpop.f32.mrb[21].mxu1  ;;  %v853_v13 = vsel %vm415_vm4, %v797_v10, -inf }
 0x627   :  { %854 = vmax.xlane.f32.xlu0 %v853_v13  ;;  %v800_v14 = vpop.f32.mrb[22].mxu1  ;;  %v847_v16 = vpop.f32.mrb[24].mxu0 }
 0x628   :  { %v1509_v19 = vpop.f32.mrb[23].mxu1  ;;  %v1514_v20 = vpop.f32.mrb[25].mxu0  ;;  %v856_v21 = vsel %vm415_vm4, %v847_v16, -inf }
 0x629   :  { %857 = vmax.xlane.f32.xlu1 %v856_v21  ;;  %v850_v22 = vpop.f32.mrb[26].mxu0 }
 0x62a   :  { %v1515_v23 = vpop.f32.mrb[27].mxu0 }
 0x63a   :  { %925 = vrot.lane.b32.xlu1 %v1936_v38, %s1742_s6 }
 0x63e   :  { %975 = vrot.lane.b32.xlu1 %v1904_v15, %s1743_s28 }
 0x642   :  { %1025 = vrot.lane.b32.xlu1 %v1906_v18, %s1743_s28 }
 0x646   :  { %1023 = vrot.lane.b32.xlu1 %v1921_v29, %s1743_s28 }
 0x6b4   :  { %v855_v24 = vpop.xlane.xlu0 %854 }
 0x6b5   :  { %v859_v25 = vsub.f32 %v797_v10, %v855_v24 }
 0x6b6   :  { %v858_v27 = vpop.xlane.xlu1 %857 }
 0x6b7   :  { %v861_v28 = vmul.f32 1.442695, %v859_v25  ;;  %v860_v30 = vsub.f32 %v847_v16, %v858_v27 }
 0x6b9   :  { %1624 = vpow2.f32 %v861_v28  ;;  %v863_v31 = vmul.f32 1.442695, %v860_v30 }
 0x6ba   :  { %v926_v32 = vpop.permute.xlu1 %925 }
 0x6bb   :  { %1626 = vpow2.f32 %v863_v31  ;;  %v931_v33 = vsel %vm443_vm3, %v926_v32, 0 }
 0x6bc   :  { %1523 = vmatpush3.bf16.msra.mxu0 %v931_v33 }
 0x6bd   :  { %1534 = vmatprep.subr.bf16.mxu0 %v1739_v0 }
 0x6be   :  { %v976_v42 = vpop.permute.xlu1 %975 }
 0x6c2   :  { %v1026_v47 = vpop.permute.xlu1 %1025 }
 0x6c3   :  { %v1625_v15 = vpop.eup %1624  ;;  %v1031_v49 = vsel %vm322_vm2, %v1026_v47, 0 }
 0x6c4   :  { %v865_v18 = vsel %vm415_vm4, %v1625_v15, 0.0 }
 0x6c5   :  { %v1627_v34 = vpop.eup %1626  ;;  %866 = vadd.xlane.f32.xlu0 %v865_v18  ;;  %v1605_v18 = vld [vmem:[%s2117_s9 + $0x8] sm:$0xff]  }
 0x6c6   :  { %v868_v29 = vsel %vm415_vm4, %v1627_v34, 0.0  ;;  %v1024_v51 = vpop.permute.xlu1 %1023 }
 0x6c9   :  { %869 = vadd.xlane.f32.xlu0 %v868_v29  ;;  %v1607_v29 = vld [vmem:[%s2117_s9 + $0x18] sm:$0xff]  }
 0x6df   :  { %877 = vrot.lane.b32.xlu0 %v1934_v35, %s1742_s6 }
 0x6e3   :  { %973 = vrot.lane.b32.xlu0 %v1919_v26, %s1743_s28  ;;  %v981_v26 = vsel %vm322_vm2, %v976_v42, 0 }
 0x752   :  { %v867_v36 = vpop.xlane.xlu0 %866 }
 0x753   :  { %1628 = vrcp.f32 %v867_v36 }
 0x756   :  { %v870_v37 = vpop.xlane.xlu0 %869 }
 0x757   :  { %1630 = vrcp.f32 %v870_v37 }
 0x75a   :  { %v878_v39 = vpop.permute.xlu0 %877 }
 0x75b   :  { %v883_v40 = vsel %vm443_vm3, %v878_v39, 0 }
 0x75c   :  { %1517 = vmatpush3.bf16.msra.mxu1 %v883_v40 }
 0x75d   :  { %v1629_v41 = vpop.eup %1628  ;;  %1528 = vmatprep.subr.bf16.mxu1 %v1739_v0 }
 0x75e   :  { %v873_v43 = vmul.f32 %v1629_v41, %v1625_v15  ;;  %v974_v50 = vpop.permute.xlu0 %973  ;;  %v1604_v15 = vld [vmem:[%s2117_s9] sm:$0xff]  }
 0x760   :  { %v875_v44 = vpack.c.bf16 %v873_v43, %v873_v43 }
 0x761   :  { %v1631_v45 = vpop.eup %1630 }
 0x762   :  { %v874_v46 = vmul.f32 %v1631_v45, %v1627_v34  ;;  %1519 = vmatmul.mubr.msk.bf16.vlgmr.msra.gmra.mrb[24].mxu1 %vm415_vm4, %v875_v44  ;;  %v1606_v34 = vld [vmem:[%s2117_s9 + $0x10] sm:$0xff]  }
 0x763   :  { %1530 = vmatprep.mubr.msk.bf16.mxu1 %vm1740_vm0, %v1739_v0 }
 0x764   :  { %v876_v48 = vpack.c.bf16 %v874_v46, %v874_v46 }
 0x765   :  { %1529 = vmatpush3.bf16.xpose.msra.mxu1 %v981_v26 }
 0x766   :  { %1525 = vmatmul.mubr.msk.bf16.vlgmr.msra.gmra.mrb[28].mxu0 %vm415_vm4, %v876_v48  ;;  %1540 = vmatprep.subr.bf16.mxu1 %v1739_v0 }
 0x767   :  { %1535 = vmatpush3.bf16.xpose.msra.mxu0 %v1031_v49  ;;  %1536 = vmatprep.mubr.msk.bf16.mxu0 %vm1740_vm0, %v1739_v0 }
 0x768   :  { %1546 = vmatprep.subr.bf16.mxu0 %v1739_v0 }
 0x76c   :  { %1531 = vmatmul.mubr.msk.bf16.vlgmr.msra.gmra.mrb[28].mxu1 %vm322_vm2, %v974_v50 }
 0x76d   :  { %1542 = vmatprep.mubr.msk.bf16.mxu1 %vm1740_vm0, %v1739_v0 }
 0x76e   :  { %1537 = vmatmul.mubr.msk.bf16.vlgmr.msra.gmra.mrb[32].mxu0 %vm322_vm2, %v1024_v51 }
 0x76f   :  { %1548 = vmatprep.mubr.msk.bf16.mxu0 %vm1740_vm0, %v1739_v0 }
 0x835   :  { %v919_v52 = vpop.f32.mrb[24].mxu1 }
 0x836   :  { %v1520_v53 = vpop.f32.mrb[25].mxu1 }
 0x837   :  { %v922_v54 = vpop.f32.mrb[26].mxu1 }
 0x838   :  { %v1521_v55 = vpop.f32.mrb[27].mxu1 }
 0x839   :  { %v967_v56 = vpop.f32.mrb[28].mxu0 }
 0x83a   :  { %v1585_v57 = vpack.i.bf16 %v967_v56, %v919_v52  ;;  %v1526_v58 = vpop.f32.mrb[29].mxu0 }
 0x83b   :  { %v970_v59 = vpop.f32.mrb[30].mxu0 }
 0x83c   :  { %v1527_v60 = vpop.f32.mrb[31].mxu0 }
 0x83d   :  { %v1372_v60 = vld [vmem:[%s2118_s10] ss:$0 sm:$0xff] }
 0x83f   :  { %v1017_v61 = vpop.f32.mrb[28].mxu1 }
 0x840   :  { %v1532_v62 = vpop.f32.mrb[29].mxu1  ;;  %v1073_v63 = vsel %vm415_vm4, %v1017_v61, -inf }
 0x841   :  { %1074 = vmax.xlane.f32.xlu0 %v1073_v63  ;;  %v1020_v2 = vpop.f32.mrb[30].mxu1  ;;  %v1067_v3 = vpop.f32.mrb[32].mxu0 }
 0x842   :  { %v1533_v4 = vpop.f32.mrb[31].mxu1  ;;  %v1538_v7 = vpop.f32.mrb[33].mxu0  ;;  %v1076_v8 = vsel %vm415_vm4, %v1067_v3, -inf }
 0x843   :  { %1077 = vmax.xlane.f32.xlu1 %v1076_v8  ;;  %v1070_v9 = vpop.f32.mrb[34].mxu0 }
 0x844   :  { %v1539_v10 = vpop.f32.mrb[35].mxu0 }
 0x854   :  { %1145 = vrot.lane.b32.xlu1 %v1936_v38, %s1743_s28 }
 0x858   :  { %1581 = vrot.lane.b32.xlu1 %v1580_v6, %s1744_s12 }
 0x85c   :  { %1586 = vrot.lane.b32.xlu1 %v1585_v57, %s1745_s13 }
 0x8ce   :  { %v1075_v11 = vpop.xlane.xlu0 %1074 }
 0x8cf   :  { %v1079_v13 = vsub.f32 %v1017_v61, %v1075_v11 }
 0x8d0   :  { %v1078_v14 = vpop.xlane.xlu1 %1077 }
 0x8d1   :  { %v1081_v16 = vmul.f32 1.442695, %v1079_v13  ;;  %v1080_v19 = vsub.f32 %v1067_v3, %v1078_v14 }
 0x8d3   :  { %1632 = vpow2.f32 %v1081_v16  ;;  %v1083_v20 = vmul.f32 1.442695, %v1080_v19 }
 0x8d4   :  { %v1146_v21 = vpop.permute.xlu1 %1145 }
 0x8d5   :  { %1634 = vpow2.f32 %v1083_v20  ;;  %v1151_v22 = vsel %vm443_vm3, %v1146_v21, 0 }
 0x8d6   :  { %1547 = vmatpush3.bf16.msra.mxu0 %v1151_v22 }
 0x8d8   :  { %v1582_v46 = vpop.permute.xlu1 %1581 }
 0x8d9   :  { %v1584_v26 = vunpack.i.h.bf16 %v1582_v46 }
 0x8db   :  { %v1218_v51 = vsel %vm322_vm2, %v1972_v17, %v1584_v26 }
 0x8dc   :  { %v1587_v47 = vpop.permute.xlu1 %1586 }
 0x8dd   :  { %v1633_v38 = vpop.eup %1632  ;;  %v1589_v48 = vunpack.i.h.bf16 %v1587_v47  ;;  %v1588_v49 = vunpack.i.l.bf16 %v1587_v47 }
 0x8de   :  { %v1085_v23 = vsel %vm415_vm4, %v1633_v38, 0.0 }
 0x8df   :  { %v1635_v24 = vpop.eup %1634  ;;  %1086 = vadd.xlane.f32.xlu0 %v1085_v23  ;;  %v1220_v56 = vsel %vm115_vm1, %v1218_v51, %v1589_v48 }
 0x8e0   :  { %v1088_v1 = vsel %vm415_vm4, %v1635_v24, 0.0 }
 0x8e3   :  { %1089 = vadd.xlane.f32.xlu0 %v1088_v1 }
 0x8f9   :  { %1097 = vrot.lane.b32.xlu0 %v1934_v35, %s1743_s28 }
 0x96c   :  { %v1087_v5 = vpop.xlane.xlu0 %1086 }
 0x96d   :  { %1636 = vrcp.f32 %v1087_v5 }
 0x970   :  { %v1090_v6 = vpop.xlane.xlu0 %1089 }
 0x971   :  { %1638 = vrcp.f32 %v1090_v6 }
 0x974   :  { %v1098_v25 = vpop.permute.xlu0 %1097 }
 0x975   :  { %v1103_v27 = vsel %vm443_vm3, %v1098_v25, 0 }
 0x976   :  { %1541 = vmatpush3.bf16.msra.mxu1 %v1103_v27 }
 0x977   :  { %v1637_v28 = vpop.eup %1636  ;;  %1552 = vmatprep.subr.bf16.mxu1 %v1739_v0 }
 0x978   :  { %v1093_v30 = vmul.f32 %v1637_v28, %v1633_v38 }
 0x97a   :  { %v1095_v31 = vpack.c.bf16 %v1093_v30, %v1093_v30 }
 0x97b   :  { %v1639_v32 = vpop.eup %1638 }
 0x97c   :  { %v1094_v33 = vmul.f32 %v1639_v32, %v1635_v24  ;;  %1543 = vmatmul.mubr.msk.bf16.vlgmr.msra.gmra.mrb[32].mxu1 %vm415_vm4, %v1095_v31 }
 0x97d   :  { %1560 = vmatprep.mubr.msk.bf16.mxu1 %vm1740_vm0, %v1739_v0  ;;  %1553 = vmatpush3.bf16.msra.mxu1 %v1604_v15 }
 0x97e   :  { %v1096_v35 = vpack.c.bf16 %v1094_v33, %v1094_v33  ;;  %1554 = vmatprep.subr.bf16.mxu1 %v1739_v0 }
 0x980   :  { %1549 = vmatmul.mubr.msk.bf16.vlgmr.msra.gmra.mrb[36].mxu0 %vm415_vm4, %v1096_v35 }
 0x981   :  { %1555 = vmatpush3.bf16.msra.mxu1 %v1605_v18 }
 0x982   :  { %1556 = vmatprep.subr.bf16.mxu1 %v1739_v0 }
 0x985   :  { %1557 = vmatpush3.bf16.msra.mxu1 %v1606_v34 }
 0x986   :  { %1558 = vmatprep.subr.bf16.mxu1 %v1739_v0  ;;  %v1583_v0 = vunpack.i.l.bf16 %v1582_v46 }
 0x988   :  { %v1217_v52 = vsel %vm322_vm2, %v1970_v12, %v1583_v0 }
 0x989   :  { %1559 = vmatpush3.bf16.msra.mxu1 %v1607_v29  ;;  %v1219_v55 = vsel %vm115_vm1, %v1217_v52, %v1588_v49 }
 0xa4f   :  { %v1139_v36 = vpop.f32.mrb[32].mxu1 }
 0xa50   :  { %v1544_v37 = vpop.f32.mrb[33].mxu1 }
 0xa51   :  { %v1142_v39 = vpop.f32.mrb[34].mxu1 }
 0xa52   :  { %v1545_v40 = vpop.f32.mrb[35].mxu1 }
 0xa53   :  { %v1187_v41 = vpop.f32.mrb[36].mxu0 }
 0xa54   :  { %v1590_v42 = vpack.i.bf16 %v1187_v41, %v1139_v36  ;;  %v1550_v43 = vpop.f32.mrb[37].mxu0 }
 0xa55   :  { %v1190_v44 = vpop.f32.mrb[38].mxu0 }
 0xa56   :  { %1591 = vrot.lane.b32.xlu0 %v1590_v42, %s1746_s29  ;;  %v1551_v45 = vpop.f32.mrb[39].mxu0 }
 0xac8   :  { %v1592_v50 = vpop.permute.xlu0 %1591 }
 0xac9   :  { %v1594_v53 = vunpack.i.h.bf16 %v1592_v50  ;;  %v1593_v54 = vunpack.i.l.bf16 %v1592_v50 }
 0xacb   :  { %v1223_v57 = vsel %vm1221_vm5, %v1220_v56, %v1594_v53  ;;  %v1222_v58 = vsel %vm1221_vm5, %v1219_v55, %v1593_v54 }
 0xacc   :  { %v1385_v59 = vpack.c.bf16 %v1223_v57, %v1222_v58 }
 0xace   :  { %1561 = vmatmul.mubr.msk.bf16.vlgmr.msra.gmra.mrb[36].mxu1 %vm1270_vm6, %v1385_v59 }
 0xba1   :  { %v1308_v61 = vpop.f32.mrb[36].mxu1 }
 0xba2   :  { %v1309_v17 = vadd.f32 %v1372_v60, %v1308_v61  ;;  %v1562_v12 = vpop.f32.mrb[37].mxu1 }
 0xba3   :  { %v1311_v62 = vpop.f32.mrb[38].mxu1 }
 0xba4   :  { %1315 = vst.msk [vmem:[#allocation8] sm:$0xff] %vm115_vm1, %v1309_v17  ;;  %v1312_v63 = vadd.f32 %v1372_v60, %v1311_v62  ;;  %v1563_v2 = vpop.f32.mrb[39].mxu1 }
 0xba6   :  { %1316 = vst.msk [vmem:[#allocation8 + $0x8] sm:$0xff] %vm115_vm1, %v1312_v63 }
 0xba7   :  { %1717 = shalt.err (!%p1714_p0)
}
 0xba8   :  { %s1718_s18 = scalar_lea.hbm %s2119_s11, 256 }
 0xba9   :  { %p1719_p1 = scmp.ne.s32.totalorder %s2119_s11, %s1718_s18  ;;  %p1722_p2 = scmp.lt.u32.totalorder %s1718_s18, %s2119_s11 }
 0xbab   :  { %p1724_p3 = pnand %p1722_p2, %p1719_p1 }
 0xbad   :  { %1727 = shalt.err (!%p1724_p3)
}
 0xbae   :  { %s1748_s25 = smov 128   ;;  %s1749_s26 = smov 8  }
 0xbaf   :  { %1328 = dma.vmem_to_hbm [thread:$0]  %s1323_s22, 256, %s2119_s11, [#allocation4], %s1748_s25, %s1748_s25, %s1749_s26  }
 0xbb0   :  { %1732 = dma.done.wait [#allocation4], 256  }
 0xbb1   :  { %1733 = vsyncadd [#allocation4], 4294967040 }
 0xbb2   :  { %1332 = vsyncpa [#allocation3], 1 }
 0xbb3   :  { %1333 = vsyncpa [#allocation6], 1 }
 0xbb4   :  { %1334 = vsyncpa [#allocation4], 1 }

// kernel: tpu_custom_call.1
= control target key start
LH: loop header
LB: loop body
LE: loop exit
PB: predicated region body
PF: predicated region fallthrough
CT: control target
= control target key end

     0   :  { %16 = vsyncpa [#allocation3], 0  ;;  %s2108_s0 = inlined_call_operand.hbm [shape: bf16[2,8,32], index: 0, kind: input, shape index: {}]   ;;  %s2109_s1 = inlined_call_operand.hbm [shape: bf16[2,8,32], index: 1, kind: input, shape index: {}]   ;;  %s2110_s2 = inlined_call_operand.hbm [shape: bf16[2,8,32], index: 2, kind: input, shape index: {}]   ;;  %s2111_s3 = inlined_call_operand.vmem [shape: bf16[32,64], index: 3, kind: input, shape index: {}]   ;;  %s2112_s4 = inlined_call_operand.vmem [shape: f32[1,64], index: 4, kind: input, shape index: {}]   ;;  %s2113_s5 = inlined_call_operand.vmem [shape: bf16[32,64], index: 5, kind: input, shape index: {}]   ;;  %s2114_s6 = inlined_call_operand.vmem [shape: f32[1,64], index: 6, kind: input, shape index: {}]   ;;  %s2115_s7 = inlined_call_operand.vmem [shape: bf16[32,64], index: 7, kind: input, shape index: {}]   ;;  %s2116_s8 = inlined_call_operand.vmem [shape: f32[1,64], index: 8, kind: input, shape index: {}]   ;;  %s2117_s9 = inlined_call_operand.vmem [shape: bf16[64,32], index: 9, kind: input, shape index: {}]   ;;  %s2118_s10 = inlined_call_operand.vmem [shape: f32[1,32], index: 10, kind: input, shape index: {}]   ;;  %s2119_s11 = inlined_call_operand.hbm [shape: f32[2,8,32], index: 11, kind: output, shape index: {}]  }
   0x1   :  { %17 = vsyncpa [#allocation6], 0 }
   0x2   :  { %18 = vsyncpa [#allocation4], 0  ;;  %s1734_s17 = smov [#allocation5]   ;;  %s1735_s19 = smov [#allocation2]  }
   0x3   :  { %s36_s18 = sshll.u32 %s1734_s17, 4  ;;  %s24_s20 = sshll.u32 %s1735_s19, 4  ;;  %s37_s18 = int_to_ptr.vmem [resolvable:$true] %s36_s18  ;;  %s1810_s20 = int_to_ptr.vmem [resolvable:$true] %s24_s20 }
   0x4   :  { %s1640_s23 = scalar_lea.hbm %s2109_s1, 128 }
   0x5   :  { %p1641_p0 = scmp.ne.s32.totalorder %s2109_s1, %s1640_s23  ;;  %p1644_p1 = scmp.lt.u32.totalorder %s1640_s23, %s2109_s1 }
   0x7   :  { %p1646_p2 = pnand %p1644_p1, %p1641_p0 }
   0x9   :  { %1649 = shalt.err (!%p1646_p2)
}
   0xa   :  { %s1650_s28 = scalar_lea.vmem %s37_s18, 128  ;;  %p1655_p4 = scmp.lt.s32.totalorder %s37_s18, %s37_s18 }
   0xb   :  { %p1651_p3 = scmp.ne.s32.totalorder %s37_s18, %s1650_s28  ;;  %p1656_p5 = scmp.lt.s32.totalorder %s1650_s28, %s1650_s28 }
   0xd   :  { %p1657_p6 = por %p1656_p5, %p1655_p4 }
   0xf   :  { %p1658_p7 = pnand %p1657_p6, %p1651_p3 }
  0x11   :  { %1661 = shalt.err (!%p1658_p7)
}
  0x12   :  { %s1736_s29 = smov 64   ;;  %s1737_s30 = smov 4  }
  0x13   :  { %42 = dma.hbm_to_vmem [thread:$0]  %s2109_s1, 128, %s37_s18, [#allocation6], %s1736_s29, %s1736_s29, %s1737_s30  }
  0x14   :  { %s1662_s16 = scalar_lea.hbm %s2108_s0, 128 }
  0x15   :  { %p1663_p8 = scmp.ne.s32.totalorder %s2108_s0, %s1662_s16  ;;  %p1666_p9 = scmp.lt.u32.totalorder %s1662_s16, %s2108_s0 }
  0x17   :  { %p1668_p10 = pnand %p1666_p9, %p1663_p8 }
  0x19   :  { %1671 = shalt.err (!%p1668_p10)
}
  0x1a   :  { %s1672_s23 = scalar_lea.vmem %s1810_s20, 128  ;;  %p1677_p12 = scmp.lt.s32.totalorder %s1810_s20, %s1810_s20 }
  0x1b   :  { %p1673_p11 = scmp.ne.s32.totalorder %s1810_s20, %s1672_s23  ;;  %p1678_p13 = scmp.lt.s32.totalorder %s1672_s23, %s1672_s23 }
  0x1d   :  { %p1679_p0 = por %p1678_p13, %p1677_p12 }
  0x1f   :  { %p1680_p1 = pnand %p1679_p0, %p1673_p11 }
  0x21   :  { %1683 = shalt.err (!%p1680_p1)
}
  0x22   :  { %30 = dma.hbm_to_vmem [thread:$0]  %s2108_s0, 128, %s1810_s20, [#allocation3], %s1736_s29, %s1736_s29, %s1737_s30  }
  0x23   :  { %s1738_s24 = smov [#allocation7]   ;;  %s1684_s28 = scalar_lea.hbm %s2110_s2, 128 }
  0x24   :  { %s48_s25 = sshll.u32 %s1738_s24, 4  ;;  %p1685_p2 = scmp.ne.s32.totalorder %s2110_s2, %s1684_s28  ;;  %s49_s25 = int_to_ptr.vmem [resolvable:$true] %s48_s25 }
  0x25   :  { %p1688_p3 = scmp.lt.u32.totalorder %s1684_s28, %s2110_s2 }
  0x27   :  { %p1690_p4 = pnand %p1688_p3, %p1685_p2 }
  0x29   :  { %1693 = shalt.err (!%p1690_p4)
}
  0x2a   :  { %s1694_s16 = scalar_lea.vmem %s49_s25, 128  ;;  %p1699_p6 = scmp.lt.s32.totalorder %s49_s25, %s49_s25 }
  0x2b   :  { %p1695_p5 = scmp.ne.s32.totalorder %s49_s25, %s1694_s16  ;;  %p1700_p7 = scmp.lt.s32.totalorder %s1694_s16, %s1694_s16 }
  0x2d   :  { %p1701_p8 = por %p1700_p7, %p1699_p6 }
  0x2f   :  { %p1702_p9 = pnand %p1701_p8, %p1695_p5 }
  0x31   :  { %1705 = shalt.err (!%p1702_p9)
}
  0x32   :  { %54 = dma.hbm_to_vmem [thread:$0]  %s2110_s2, 128, %s49_s25, [#allocation6], %s1736_s29, %s1736_s29, %s1737_s30  }
  0x33   :  { %1728 = dma.done.wait [#allocation3], 128  }
  0x34   :  { %1729 = vsyncadd [#allocation3], 4294967168 }
  0x35   :  { %1730 = dma.done.wait [#allocation6], 256  }
  0x36   :  { %1731 = vsyncadd [#allocation6], 4294967040  ;;  %v1739_v0 = vmov 0.0   ;;  %vm1740_vm0 = vmmov 0   ;;  %v1595_v1 = vld [vmem:[%s2111_s3] sm:$0xff]   ;;  %v1596_v2 = vld [vmem:[%s2111_s3 + $0x8] sm:$0xff]  }
  0x37   :  { %1432 = vmatprep.subr.bf16.mxu0 %v1739_v0  ;;  %1436 = vmatprep.mubr.msk.bf16.mxu0 %vm1740_vm0, %v1739_v0  ;;  %v1597_v3 = vld [vmem:[#allocation2] sm:$0xff]   ;;  %vm115_vm1 = vcmask 261120   ;;  %v1599_v6 = vld [vmem:[%s2115_s7 + $0x8] sm:$0xff]   ;;  %v1600_v8 = vld [vmem:[#allocation7] sm:$0xff]   ;;  %vm322_vm2 = vcmask 130048   ;;  %vm443_vm3 = vcmask 1043456  }
  0x38   :  { %1440 = vmatprep.subr.bf16.mxu1 %v1739_v0  ;;  %1444 = vmatprep.mubr.msk.bf16.mxu1 %vm1740_vm0, %v1739_v0  ;;  %v1598_v4 = vld [vmem:[%s2115_s7] sm:$0xff]   ;;  %v1602_v7 = vld [vmem:[%s2113_s5 + $0x8] sm:$0xff]   ;;  %vm415_vm4 = vcmask 64512   ;;  %s1743_s28 = smov 80   ;;  %s1744_s12 = smov 16   ;;  %vm1221_vm5 = vcmask 392192  }
  0x39   :  { %1433 = vmatpush3.bf16.msra.mxu0 %v1595_v1  ;;  %v1601_v5 = vld [vmem:[%s2113_s5] sm:$0xff]   ;;  %v1603_v9 = vld [vmem:[#allocation5] sm:$0xff]   ;;  %s1745_s13 = smov 32   ;;  %s1746_s29 = smov 48   ;;  %vm1270_vm6 = vcmask 523264  }
  0x3a   :  { %1434 = vmatprep.subr.bf16.mxu0 %v1739_v0  ;;  %1441 = vmatpush3.bf16.msra.mxu1 %v1601_v5  ;;  %v1335_v10 = vld [vmem:[%s2112_s4] ss:$0 sm:$0xff]  ;;  %s1741_s4 = smov 112   ;;  %s1747_s21 = smov [#allocation8]  }
  0x3b   :  { %1442 = vmatprep.subr.bf16.mxu1 %v1739_v0  ;;  %v1345_v20 = vld [vmem:[%s2116_s8] ss:$0 sm:$0xff]  ;;  %s1322_s22 = sshll.u32 %s1747_s21, 4  ;;  %s1323_s22 = int_to_ptr.vmem [resolvable:$true] %s1322_s22 }
  0x3c   :  { %v1340_v30 = vld [vmem:[%s2114_s6] ss:$0 sm:$0xff]  ;;  %s1742_s6 = smov 96   ;;  %s1706_s23 = scalar_lea.vmem %s1323_s22, 256 }
  0x3d   :  { %1435 = vmatpush3.bf16.msra.mxu0 %v1596_v2  ;;  %p1707_p10 = scmp.ne.s32.totalorder %s1323_s22, %s1706_s23  ;;  %p1711_p11 = scmp.lt.s32.totalorder %s1323_s22, %s1323_s22 }
  0x3e   :  { %1448 = vmatprep.subr.bf16.mxu0 %v1739_v0  ;;  %1443 = vmatpush3.bf16.msra.mxu1 %v1602_v7  ;;  %p1712_p12 = scmp.lt.s32.totalorder %s1706_s23, %s1706_s23 }
  0x3f   :  { %1456 = vmatprep.subr.bf16.mxu1 %v1739_v0 }
  0x40   :  { %1437 = vmatmul.mubr.msk.bf16.vlgmr.msra.gmra.mrb[0].mxu0 %vm115_vm1, %v1597_v3  ;;  %p1713_p13 = por %p1712_p12, %p1711_p11 }
  0x41   :  { %1449 = vmatpush3.bf16.msra.mxu0 %v1598_v4  ;;  %1452 = vmatprep.mubr.msk.bf16.mxu0 %vm1740_vm0, %v1739_v0 }
  0x42   :  { %1450 = vmatprep.subr.bf16.mxu0 %v1739_v0  ;;  %1445 = vmatmul.mubr.msk.bf16.vlgmr.msra.gmra.mrb[0].mxu1 %vm115_vm1, %v1603_v9  ;;  %p1714_p0 = pnand %p1713_p13, %p1707_p10 }
  0x43   :  { %1458 = vmatprep.mubr.msk.bf16.mxu1 %vm1740_vm0, %v1739_v0 }
  0x45   :  { %1451 = vmatpush3.bf16.msra.mxu0 %v1599_v6 }
  0x46   :  { %1462 = vmatprep.subr.bf16.mxu0 %v1739_v0 }
  0x48   :  { %1453 = vmatmul.mubr.msk.bf16.vlgmr.msra.gmra.mrb[4].mxu0 %vm115_vm1, %v1600_v8 }
  0x49   :  { %1464 = vmatprep.mubr.msk.bf16.mxu0 %vm1740_vm0, %v1739_v0 }
 0x113   :  { %v153_v11 = vpop.f32.mrb[0].mxu0 }
 0x114   :  { %v154_v12 = vadd.f32 %v1335_v10, %v153_v11  ;;  %v1438_v13 = vpop.f32.mrb[1].mxu0 }
 0x115   :  { %v156_v14 = vpop.f32.mrb[2].mxu0  ;;  %v225_v31 = vpop.f32.mrb[0].mxu1 }
 0x116   :  { %v1904_v15 = vpack.c.bf16 %v154_v12, %v154_v12  ;;  %v157_v16 = vadd.f32 %v1335_v10, %v156_v14  ;;  %v1439_v17 = vpop.f32.mrb[3].mxu0  ;;  %v226_v32 = vadd.f32 %v1340_v30, %v225_v31  ;;  %v1446_v33 = vpop.f32.mrb[1].mxu1 }
 0x117   :  { %v228_v34 = vpop.f32.mrb[2].mxu1 }
 0x118   :  { %v1906_v18 = vpack.c.bf16 %v157_v16, %v157_v16  ;;  %v327_v19 = vsel %vm322_vm2, %v1904_v15, 0  ;;  %v1934_v35 = vpack.c.bf16 %v226_v32, %v226_v32  ;;  %v229_v36 = vadd.f32 %v1340_v30, %v228_v34  ;;  %v1447_v37 = vpop.f32.mrb[3].mxu1 }
 0x119   :  { %1457 = vmatpush3.bf16.xpose.msra.mxu1 %v327_v19 }
 0x11a   :  { %585 = vrot.lane.b32.xlu1 %v1906_v18, %s1741_s4  ;;  %v373_v21 = vsel %vm322_vm2, %v1906_v18, 0  ;;  %1468 = vmatprep.subr.bf16.mxu1 %v1739_v0  ;;  %v1936_v38 = vpack.c.bf16 %v229_v36, %v229_v36  ;;  %v445_v39 = vsel %vm443_vm3, %v1934_v35, 0 }
 0x11b   :  { %v297_v22 = vpop.f32.mrb[4].mxu0  ;;  %1463 = vmatpush3.bf16.xpose.msra.mxu0 %v373_v21 }
 0x11c   :  { %v298_v23 = vadd.f32 %v1345_v20, %v297_v22  ;;  %v1454_v24 = vpop.f32.mrb[5].mxu0  ;;  %1474 = vmatprep.subr.bf16.mxu0 %v1739_v0  ;;  %v491_v40 = vsel %vm443_vm3, %v1936_v38, 0 }
 0x11d   :  { %v300_v25 = vpop.f32.mrb[6].mxu0 }
 0x11e   :  { %v1919_v26 = vpack.c.bf16 %v298_v23, %v298_v23  ;;  %v301_v27 = vadd.f32 %v1345_v20, %v300_v25  ;;  %v1455_v28 = vpop.f32.mrb[7].mxu0 }
 0x120   :  { %v1921_v29 = vpack.c.bf16 %v301_v27, %v301_v27  ;;  %1459 = vmatmul.mubr.msk.bf16.vlgmr.msra.gmra.mrb[4].mxu1 %vm322_vm2, %v1919_v26 }
 0x121   :  { %1470 = vmatprep.mubr.msk.bf16.mxu1 %vm1740_vm0, %v1739_v0  ;;  %1469 = vmatpush3.bf16.msra.mxu1 %v445_v39 }
 0x122   :  { %1465 = vmatmul.mubr.msk.bf16.vlgmr.msra.gmra.mrb[8].mxu0 %vm322_vm2, %v1921_v29  ;;  %1480 = vmatprep.subr.bf16.mxu1 %v1739_v0 }
 0x123   :  { %1476 = vmatprep.mubr.msk.bf16.mxu0 %vm1740_vm0, %v1739_v0  ;;  %1475 = vmatpush3.bf16.msra.mxu0 %v491_v40 }
 0x124   :  { %1486 = vmatprep.subr.bf16.mxu0 %v1739_v0 }
 0x18c   :  { %v586_v61 = vpop.permute.xlu1 %585 }
 0x18d   :  { %v591_v9 = vsel %vm322_vm2, %v586_v61, 0 }
 0x1f3   :  { %v363_v41 = vpop.f32.mrb[4].mxu1 }
 0x1f4   :  { %v1460_v42 = vpop.f32.mrb[5].mxu1  ;;  %v416_v43 = vsel %vm415_vm4, %v363_v41, -inf }
 0x1f5   :  { %417 = vmax.xlane.f32.xlu0 %v416_v43  ;;  %v366_v44 = vpop.f32.mrb[6].mxu1  ;;  %v409_v45 = vpop.f32.mrb[8].mxu0 }
 0x1f6   :  { %v1461_v46 = vpop.f32.mrb[7].mxu1  ;;  %v1466_v47 = vpop.f32.mrb[9].mxu0  ;;  %v419_v50 = vsel %vm415_vm4, %v409_v45, -inf }
 0x1f7   :  { %v412_v48 = vpop.f32.mrb[10].mxu0 }
 0x1f8   :  { %v1467_v49 = vpop.f32.mrb[11].mxu0 }
 0x1f9   :  { %420 = vmax.xlane.f32.xlu0 %v419_v50 }
 0x20f   :  { %535 = vrot.lane.b32.xlu0 %v1904_v15, %s1741_s4 }
 0x282   :  { %v418_v51 = vpop.xlane.xlu0 %417 }
 0x283   :  { %v422_v52 = vsub.f32 %v363_v41, %v418_v51 }
 0x285   :  { %v424_v53 = vmul.f32 1.442695, %v422_v52 }
 0x286   :  { %v421_v54 = vpop.xlane.xlu0 %420 }
 0x287   :  { %1608 = vpow2.f32 %v424_v53  ;;  %v423_v55 = vsub.f32 %v409_v45, %v421_v54 }
 0x289   :  { %v426_v56 = vmul.f32 1.442695, %v423_v55 }
 0x28a   :  { %v536_v3 = vpop.permute.xlu0 %535 }
 0x28b   :  { %1610 = vpow2.f32 %v426_v56  ;;  %v541_v6 = vsel %vm322_vm2, %v536_v3, 0 }
 0x291   :  { %v1609_v57 = vpop.eup %1608 }
 0x292   :  { %v428_v58 = vsel %vm415_vm4, %v1609_v57, 0.0 }
 0x293   :  { %429 = vadd.xlane.f32.xlu1 %v428_v58 }
 0x295   :  { %v1611_v59 = vpop.eup %1610 }
 0x296   :  { %v431_v60 = vsel %vm415_vm4, %v1611_v59, 0.0 }
 0x297   :  { %432 = vadd.xlane.f32.xlu1 %v431_v60 }
 0x2a8   :  { %533 = vrot.lane.b32.xlu1 %v1919_v26, %s1741_s4 }
 0x2ac   :  { %583 = vrot.lane.b32.xlu1 %v1921_v29, %s1741_s4 }
 0x320   :  { %v430_v62 = vpop.xlane.xlu1 %429 }
 0x321   :  { %1612 = vrcp.f32 %v430_v62 }
 0x324   :  { %v433_v63 = vpop.xlane.xlu1 %432 }
 0x325   :  { %1614 = vrcp.f32 %v433_v63 }
 0x328   :  { %v534_v10 = vpop.permute.xlu1 %533 }
 0x32b   :  { %v1613_v1 = vpop.eup %1612 }
 0x32c   :  { %v436_v2 = vmul.f32 %v1613_v1, %v1609_v57  ;;  %v584_v11 = vpop.permute.xlu1 %583 }
 0x32e   :  { %v438_v4 = vpack.c.bf16 %v436_v2, %v436_v2 }
 0x32f   :  { %v1615_v5 = vpop.eup %1614 }
 0x330   :  { %v437_v7 = vmul.f32 %v1615_v5, %v1611_v59  ;;  %1471 = vmatmul.mubr.msk.bf16.vlgmr.msra.gmra.mrb[8].mxu1 %vm415_vm4, %v438_v4 }
 0x331   :  { %1481 = vmatpush3.bf16.xpose.msra.mxu1 %v541_v6  ;;  %1482 = vmatprep.mubr.msk.bf16.mxu1 %vm1740_vm0, %v1739_v0 }
 0x332   :  { %v439_v8 = vpack.c.bf16 %v437_v7, %v437_v7  ;;  %1492 = vmatprep.subr.bf16.mxu1 %v1739_v0 }
 0x334   :  { %1477 = vmatmul.mubr.msk.bf16.vlgmr.msra.gmra.mrb[12].mxu0 %vm415_vm4, %v439_v8 }
 0x335   :  { %1487 = vmatpush3.bf16.xpose.msra.mxu0 %v591_v9  ;;  %1488 = vmatprep.mubr.msk.bf16.mxu0 %vm1740_vm0, %v1739_v0 }
 0x336   :  { %1498 = vmatprep.subr.bf16.mxu0 %v1739_v0 }
 0x338   :  { %1483 = vmatmul.mubr.msk.bf16.vlgmr.msra.gmra.mrb[12].mxu1 %vm322_vm2, %v534_v10 }
 0x339   :  { %1494 = vmatprep.mubr.msk.bf16.mxu1 %vm1740_vm0, %v1739_v0 }
 0x33c   :  { %1489 = vmatmul.mubr.msk.bf16.vlgmr.msra.gmra.mrb[16].mxu0 %vm322_vm2, %v584_v11 }
 0x33d   :  { %1500 = vmatprep.mubr.msk.bf16.mxu0 %vm1740_vm0, %v1739_v0 }
 0x403   :  { %v1970_v12 = vpop.f32.mrb[8].mxu1 }
 0x404   :  { %v1472_v13 = vpop.f32.mrb[9].mxu1 }
 0x405   :  { %v484_v14 = vpop.f32.mrb[10].mxu1 }
 0x406   :  { %v1473_v16 = vpop.f32.mrb[11].mxu1 }
 0x407   :  { %v1972_v17 = vpop.f32.mrb[12].mxu0 }
 0x408   :  { %v1478_v19 = vpop.f32.mrb[13].mxu0 }
 0x409   :  { %v530_v20 = vpop.f32.mrb[14].mxu0 }
 0x40a   :  { %v1479_v21 = vpop.f32.mrb[15].mxu0 }
 0x40b   :  { %v577_v22 = vpop.f32.mrb[12].mxu1 }
 0x40c   :  { %v1484_v23 = vpop.f32.mrb[13].mxu1  ;;  %v633_v24 = vsel %vm415_vm4, %v577_v22, -inf }
 0x40d   :  { %634 = vmax.xlane.f32.xlu0 %v633_v24  ;;  %v580_v25 = vpop.f32.mrb[14].mxu1 }
 0x40e   :  { %v1485_v27 = vpop.f32.mrb[15].mxu1 }
 0x40f   :  { %v627_v28 = vpop.f32.mrb[16].mxu0 }
 0x410   :  { %v1490_v30 = vpop.f32.mrb[17].mxu0  ;;  %v636_v31 = vsel %vm415_vm4, %v627_v28, -inf }
 0x411   :  { %637 = vmax.xlane.f32.xlu1 %v636_v31  ;;  %v630_v32 = vpop.f32.mrb[18].mxu0 }
 0x412   :  { %v1491_v33 = vpop.f32.mrb[19].mxu0 }
 0x422   :  { %705 = vrot.lane.b32.xlu1 %v1936_v38, %s1741_s4 }
 0x426   :  { %755 = vrot.lane.b32.xlu1 %v1904_v15, %s1742_s6 }
 0x42a   :  { %805 = vrot.lane.b32.xlu1 %v1906_v18, %s1742_s6 }
 0x42e   :  { %803 = vrot.lane.b32.xlu1 %v1921_v29, %s1742_s6 }
 0x49a   :  { %v635_v34 = vpop.xlane.xlu0 %634 }
 0x49b   :  { %v639_v36 = vsub.f32 %v577_v22, %v635_v34 }
 0x49d   :  { %v641_v37 = vmul.f32 1.442695, %v639_v36 }
 0x49e   :  { %v638_v39 = vpop.xlane.xlu1 %637 }
 0x49f   :  { %1616 = vpow2.f32 %v641_v37  ;;  %v640_v40 = vsub.f32 %v627_v28, %v638_v39 }
 0x4a1   :  { %v643_v41 = vmul.f32 1.442695, %v640_v40 }
 0x4a2   :  { %v706_v42 = vpop.permute.xlu1 %705 }
 0x4a3   :  { %1618 = vpow2.f32 %v643_v41  ;;  %v711_v43 = vsel %vm443_vm3, %v706_v42, 0 }
 0x4a4   :  { %1499 = vmatpush3.bf16.msra.mxu0 %v711_v43 }
 0x4a5   :  { %1510 = vmatprep.subr.bf16.mxu0 %v1739_v0 }
 0x4a6   :  { %v756_v53 = vpop.permute.xlu1 %755 }
 0x4a7   :  { %v761_v59 = vsel %vm322_vm2, %v756_v53, 0 }
 0x4a9   :  { %v1617_v44 = vpop.eup %1616 }
 0x4aa   :  { %v645_v45 = vsel %vm415_vm4, %v1617_v44, 0.0  ;;  %v806_v58 = vpop.permute.xlu1 %805 }
 0x4ab   :  { %646 = vadd.xlane.f32.xlu0 %v645_v45  ;;  %v811_v61 = vsel %vm322_vm2, %v806_v58, 0 }
 0x4ad   :  { %v1619_v46 = vpop.eup %1618 }
 0x4ae   :  { %v648_v47 = vsel %vm415_vm4, %v1619_v46, 0.0  ;;  %v804_v63 = vpop.permute.xlu1 %803 }
 0x4af   :  { %649 = vadd.xlane.f32.xlu0 %v648_v47 }
 0x4c5   :  { %657 = vrot.lane.b32.xlu0 %v1934_v35, %s1741_s4 }
 0x4c9   :  { %753 = vrot.lane.b32.xlu0 %v1919_v26, %s1742_s6 }
 0x538   :  { %v647_v48 = vpop.xlane.xlu0 %646 }
 0x539   :  { %1620 = vrcp.f32 %v647_v48 }
 0x53c   :  { %v650_v49 = vpop.xlane.xlu0 %649 }
 0x53d   :  { %1622 = vrcp.f32 %v650_v49 }
 0x540   :  { %v658_v50 = vpop.permute.xlu0 %657 }
 0x541   :  { %v663_v51 = vsel %vm443_vm3, %v658_v50, 0 }
 0x542   :  { %1493 = vmatpush3.bf16.msra.mxu1 %v663_v51 }
 0x543   :  { %v1621_v52 = vpop.eup %1620  ;;  %1504 = vmatprep.subr.bf16.mxu1 %v1739_v0 }
 0x544   :  { %v653_v54 = vmul.f32 %v1621_v52, %v1617_v44  ;;  %v754_v62 = vpop.permute.xlu0 %753 }
 0x546   :  { %v655_v55 = vpack.c.bf16 %v653_v54, %v653_v54 }
 0x547   :  { %v1623_v56 = vpop.eup %1622 }
 0x548   :  { %v654_v57 = vmul.f32 %v1623_v56, %v1619_v46  ;;  %1495 = vmatmul.mubr.msk.bf16.vlgmr.msra.gmra.mrb[16].mxu1 %vm415_vm4, %v655_v55 }
 0x549   :  { %1506 = vmatprep.mubr.msk.bf16.mxu1 %vm1740_vm0, %v1739_v0 }
 0x54a   :  { %v656_v60 = vpack.c.bf16 %v654_v57, %v654_v57 }
 0x54b   :  { %1505 = vmatpush3.bf16.xpose.msra.mxu1 %v761_v59 }
 0x54c   :  { %1501 = vmatmul.mubr.msk.bf16.vlgmr.msra.gmra.mrb[20].mxu0 %vm415_vm4, %v656_v60  ;;  %1516 = vmatprep.subr.bf16.mxu1 %v1739_v0 }
 0x54d   :  { %1511 = vmatpush3.bf16.xpose.msra.mxu0 %v811_v61  ;;  %1512 = vmatprep.mubr.msk.bf16.mxu0 %vm1740_vm0, %v1739_v0 }
 0x54e   :  { %1522 = vmatprep.subr.bf16.mxu0 %v1739_v0 }
 0x552   :  { %1507 = vmatmul.mubr.msk.bf16.vlgmr.msra.gmra.mrb[20].mxu1 %vm322_vm2, %v754_v62 }
 0x553   :  { %1518 = vmatprep.mubr.msk.bf16.mxu1 %vm1740_vm0, %v1739_v0 }
 0x554   :  { %1513 = vmatmul.mubr.msk.bf16.vlgmr.msra.gmra.mrb[24].mxu0 %vm322_vm2, %v804_v63 }
 0x555   :  { %1524 = vmatprep.mubr.msk.bf16.mxu0 %vm1740_vm0, %v1739_v0 }
 0x61b   :  { %v2010_v1 = vpop.f32.mrb[16].mxu1 }
 0x61c   :  { %v1496_v2 = vpop.f32.mrb[17].mxu1 }
 0x61d   :  { %v702_v3 = vpop.f32.mrb[18].mxu1 }
 0x61e   :  { %v1497_v4 = vpop.f32.mrb[19].mxu1 }
 0x61f   :  { %v2012_v5 = vpop.f32.mrb[20].mxu0 }
 0x620   :  { %v1580_v6 = vpack.i.bf16 %v2012_v5, %v2010_v1  ;;  %v1502_v7 = vpop.f32.mrb[21].mxu0 }
 0x621   :  { %v750_v8 = vpop.f32.mrb[22].mxu0 }
 0x622   :  { %v1503_v9 = vpop.f32.mrb[23].mxu0 }
 0x625   :  { %v797_v10 = vpop.f32.mrb[20].mxu1 }
 0x626   :  { %v1508_v11 = vpop.f32.mrb[21].mxu1  ;;  %v853_v13 = vsel %vm415_vm4, %v797_v10, -inf }
 0x627   :  { %854 = vmax.xlane.f32.xlu0 %v853_v13  ;;  %v800_v14 = vpop.f32.mrb[22].mxu1  ;;  %v847_v16 = vpop.f32.mrb[24].mxu0 }
 0x628   :  { %v1509_v19 = vpop.f32.mrb[23].mxu1  ;;  %v1514_v20 = vpop.f32.mrb[25].mxu0  ;;  %v856_v21 = vsel %vm415_vm4, %v847_v16, -inf }
 0x629   :  { %857 = vmax.xlane.f32.xlu1 %v856_v21  ;;  %v850_v22 = vpop.f32.mrb[26].mxu0 }
 0x62a   :  { %v1515_v23 = vpop.f32.mrb[27].mxu0 }
 0x63a   :  { %925 = vrot.lane.b32.xlu1 %v1936_v38, %s1742_s6 }
 0x63e   :  { %975 = vrot.lane.b32.xlu1 %v1904_v15, %s1743_s28 }
 0x642   :  { %1025 = vrot.lane.b32.xlu1 %v1906_v18, %s1743_s28 }
 0x646   :  { %1023 = vrot.lane.b32.xlu1 %v1921_v29, %s1743_s28 }
 0x6b4   :  { %v855_v24 = vpop.xlane.xlu0 %854 }
 0x6b5   :  { %v859_v25 = vsub.f32 %v797_v10, %v855_v24 }
 0x6b6   :  { %v858_v27 = vpop.xlane.xlu1 %857 }
 0x6b7   :  { %v861_v28 = vmul.f32 1.442695, %v859_v25  ;;  %v860_v30 = vsub.f32 %v847_v16, %v858_v27 }
 0x6b9   :  { %1624 = vpow2.f32 %v861_v28  ;;  %v863_v31 = vmul.f32 1.442695, %v860_v30 }
 0x6ba   :  { %v926_v32 = vpop.permute.xlu1 %925 }
 0x6bb   :  { %1626 = vpow2.f32 %v863_v31  ;;  %v931_v33 = vsel %vm443_vm3, %v926_v32, 0 }
 0x6bc   :  { %1523 = vmatpush3.bf16.msra.mxu0 %v931_v33 }
 0x6bd   :  { %1534 = vmatprep.subr.bf16.mxu0 %v1739_v0 }
 0x6be   :  { %v976_v42 = vpop.permute.xlu1 %975 }
 0x6c2   :  { %v1026_v47 = vpop.permute.xlu1 %1025 }
 0x6c3   :  { %v1625_v15 = vpop.eup %1624  ;;  %v1031_v49 = vsel %vm322_vm2, %v1026_v47, 0 }
 0x6c4   :  { %v865_v18 = vsel %vm415_vm4, %v1625_v15, 0.0 }
 0x6c5   :  { %v1627_v34 = vpop.eup %1626  ;;  %866 = vadd.xlane.f32.xlu0 %v865_v18  ;;  %v1605_v18 = vld [vmem:[%s2117_s9 + $0x8] sm:$0xff]  }
 0x6c6   :  { %v868_v29 = vsel %vm415_vm4, %v1627_v34, 0.0  ;;  %v1024_v51 = vpop.permute.xlu1 %1023 }
 0x6c9   :  { %869 = vadd.xlane.f32.xlu0 %v868_v29  ;;  %v1607_v29 = vld [vmem:[%s2117_s9 + $0x18] sm:$0xff]  }
 0x6df   :  { %877 = vrot.lane.b32.xlu0 %v1934_v35, %s1742_s6 }
 0x6e3   :  { %973 = vrot.lane.b32.xlu0 %v1919_v26, %s1743_s28  ;;  %v981_v26 = vsel %vm322_vm2, %v976_v42, 0 }
 0x752   :  { %v867_v36 = vpop.xlane.xlu0 %866 }
 0x753   :  { %1628 = vrcp.f32 %v867_v36 }
 0x756   :  { %v870_v37 = vpop.xlane.xlu0 %869 }
 0x757   :  { %1630 = vrcp.f32 %v870_v37 }
 0x75a   :  { %v878_v39 = vpop.permute.xlu0 %877 }
 0x75b   :  { %v883_v40 = vsel %vm443_vm3, %v878_v39, 0 }
 0x75c   :  { %1517 = vmatpush3.bf16.msra.mxu1 %v883_v40 }
 0x75d   :  { %v1629_v41 = vpop.eup %1628  ;;  %1528 = vmatprep.subr.bf16.mxu1 %v1739_v0 }
 0x75e   :  { %v873_v43 = vmul.f32 %v1629_v41, %v1625_v15  ;;  %v974_v50 = vpop.permute.xlu0 %973  ;;  %v1604_v15 = vld [vmem:[%s2117_s9] sm:$0xff]  }
 0x760   :  { %v875_v44 = vpack.c.bf16 %v873_v43, %v873_v43 }
 0x761   :  { %v1631_v45 = vpop.eup %1630 }
 0x762   :  { %v874_v46 = vmul.f32 %v1631_v45, %v1627_v34  ;;  %1519 = vmatmul.mubr.msk.bf16.vlgmr.msra.gmra.mrb[24].mxu1 %vm415_vm4, %v875_v44  ;;  %v1606_v34 = vld [vmem:[%s2117_s9 + $0x10] sm:$0xff]  }
 0x763   :  { %1530 = vmatprep.mubr.msk.bf16.mxu1 %vm1740_vm0, %v1739_v0 }
 0x764   :  { %v876_v48 = vpack.c.bf16 %v874_v46, %v874_v46 }
 0x765   :  { %1529 = vmatpush3.bf16.xpose.msra.mxu1 %v981_v26 }
 0x766   :  { %1525 = vmatmul.mubr.msk.bf16.vlgmr.msra.gmra.mrb[28].mxu0 %vm415_vm4, %v876_v48  ;;  %1540 = vmatprep.subr.bf16.mxu1 %v1739_v0 }
 0x767   :  { %1535 = vmatpush3.bf16.xpose.msra.mxu0 %v1031_v49  ;;  %1536 = vmatprep.mubr.msk.bf16.mxu0 %vm1740_vm0, %v1739_v0 }
 0x768   :  { %1546 = vmatprep.subr.bf16.mxu0 %v1739_v0 }
 0x76c   :  { %1531 = vmatmul.mubr.msk.bf16.vlgmr.msra.gmra.mrb[28].mxu1 %vm322_vm2, %v974_v50 }
 0x76d   :  { %1542 = vmatprep.mubr.msk.bf16.mxu1 %vm1740_vm0, %v1739_v0 }
 0x76e   :  { %1537 = vmatmul.mubr.msk.bf16.vlgmr.msra.gmra.mrb[32].mxu0 %vm322_vm2, %v1024_v51 }
 0x76f   :  { %1548 = vmatprep.mubr.msk.bf16.mxu0 %vm1740_vm0, %v1739_v0 }
 0x835   :  { %v919_v52 = vpop.f32.mrb[24].mxu1 }
 0x836   :  { %v1520_v53 = vpop.f32.mrb[25].mxu1 }
 0x837   :  { %v922_v54 = vpop.f32.mrb[26].mxu1 }
 0x838   :  { %v1521_v55 = vpop.f32.mrb[27].mxu1 }
 0x839   :  { %v967_v56 = vpop.f32.mrb[28].mxu0 }
 0x83a   :  { %v1585_v57 = vpack.i.bf16 %v967_v56, %v919_v52  ;;  %v1526_v58 = vpop.f32.mrb[29].mxu0 }
 0x83b   :  { %v970_v59 = vpop.f32.mrb[30].mxu0 }
 0x83c   :  { %v1527_v60 = vpop.f32.mrb[31].mxu0 }
 0x83d   :  { %v1372_v60 = vld [vmem:[%s2118_s10] ss:$0 sm:$0xff] }
 0x83f   :  { %v1017_v61 = vpop.f32.mrb[28].mxu1 }
 0x840   :  { %v1532_v62 = vpop.f32.mrb[29].mxu1  ;;  %v1073_v63 = vsel %vm415_vm4, %v1017_v61, -inf }
 0x841   :  { %1074 = vmax.xlane.f32.xlu0 %v1073_v63  ;;  %v1020_v2 = vpop.f32.mrb[30].mxu1  ;;  %v1067_v3 = vpop.f32.mrb[32].mxu0 }
 0x842   :  { %v1533_v4 = vpop.f32.mrb[31].mxu1  ;;  %v1538_v7 = vpop.f32.mrb[33].mxu0  ;;  %v1076_v8 = vsel %vm415_vm4, %v1067_v3, -inf }
 0x843   :  { %1077 = vmax.xlane.f32.xlu1 %v1076_v8  ;;  %v1070_v9 = vpop.f32.mrb[34].mxu0 }
 0x844   :  { %v1539_v10 = vpop.f32.mrb[35].mxu0 }
 0x854   :  { %1145 = vrot.lane.b32.xlu1 %v1936_v38, %s1743_s28 }
 0x858   :  { %1581 = vrot.lane.b32.xlu1 %v1580_v6, %s1744_s12 }
 0x85c   :  { %1586 = vrot.lane.b32.xlu1 %v1585_v57, %s1745_s13 }
 0x8ce   :  { %v1075_v11 = vpop.xlane.xlu0 %1074 }
 0x8cf   :  { %v1079_v13 = vsub.f32 %v1017_v61, %v1075_v11 }
 0x8d0   :  { %v1078_v14 = vpop.xlane.xlu1 %1077 }
 0x8d1   :  { %v1081_v16 = vmul.f32 1.442695, %v1079_v13  ;;  %v1080_v19 = vsub.f32 %v1067_v3, %v1078_v14 }
 0x8d3   :  { %1632 = vpow2.f32 %v1081_v16  ;;  %v1083_v20 = vmul.f32 1.442695, %v1080_v19 }
 0x8d4   :  { %v1146_v21 = vpop.permute.xlu1 %1145 }
 0x8d5   :  { %1634 = vpow2.f32 %v1083_v20  ;;  %v1151_v22 = vsel %vm443_vm3, %v1146_v21, 0 }
 0x8d6   :  { %1547 = vmatpush3.bf16.msra.mxu0 %v1151_v22 }
 0x8d8   :  { %v1582_v46 = vpop.permute.xlu1 %1581 }
 0x8d9   :  { %v1584_v26 = vunpack.i.h.bf16 %v1582_v46 }
 0x8db   :  { %v1218_v51 = vsel %vm322_vm2, %v1972_v17, %v1584_v26 }
 0x8dc   :  { %v1587_v47 = vpop.permute.xlu1 %1586 }
 0x8dd   :  { %v1633_v38 = vpop.eup %1632  ;;  %v1589_v48 = vunpack.i.h.bf16 %v1587_v47  ;;  %v1588_v49 = vunpack.i.l.bf16 %v1587_v47 }
 0x8de   :  { %v1085_v23 = vsel %vm415_vm4, %v1633_v38, 0.0 }
 0x8df   :  { %v1635_v24 = vpop.eup %1634  ;;  %1086 = vadd.xlane.f32.xlu0 %v1085_v23  ;;  %v1220_v56 = vsel %vm115_vm1, %v1218_v51, %v1589_v48 }
 0x8e0   :  { %v1088_v1 = vsel %vm415_vm4, %v1635_v24, 0.0 }
 0x8e3   :  { %1089 = vadd.xlane.f32.xlu0 %v1088_v1 }
 0x8f9   :  { %1097 = vrot.lane.b32.xlu0 %v1934_v35, %s1743_s28 }
 0x96c   :  { %v1087_v5 = vpop.xlane.xlu0 %1086 }
 0x96d   :  { %1636 = vrcp.f32 %v1087_v5 }
 0x970   :  { %v1090_v6 = vpop.xlane.xlu0 %1089 }
 0x971   :  { %1638 = vrcp.f32 %v1090_v6 }
 0x974   :  { %v1098_v25 = vpop.permute.xlu0 %1097 }
 0x975   :  { %v1103_v27 = vsel %vm443_vm3, %v1098_v25, 0 }
 0x976   :  { %1541 = vmatpush3.bf16.msra.mxu1 %v1103_v27 }
 0x977   :  { %v1637_v28 = vpop.eup %1636  ;;  %1552 = vmatprep.subr.bf16.mxu1 %v1739_v0 }
 0x978   :  { %v1093_v30 = vmul.f32 %v1637_v28, %v1633_v38 }
 0x97a   :  { %v1095_v31 = vpack.c.bf16 %v1093_v30, %v1093_v30 }
 0x97b   :  { %v1639_v32 = vpop.eup %1638 }
 0x97c   :  { %v1094_v33 = vmul.f32 %v1639_v32, %v1635_v24  ;;  %1543 = vmatmul.mubr.msk.bf16.vlgmr.msra.gmra.mrb[32].mxu1 %vm415_vm4, %v1095_v31 }
 0x97d   :  { %1560 = vmatprep.mubr.msk.bf16.mxu1 %vm1740_vm0, %v1739_v0  ;;  %1553 = vmatpush3.bf16.msra.mxu1 %v1604_v15 }
 0x97e   :  { %v1096_v35 = vpack.c.bf16 %v1094_v33, %v1094_v33  ;;  %1554 = vmatprep.subr.bf16.mxu1 %v1739_v0 }
 0x980   :  { %1549 = vmatmul.mubr.msk.bf16.vlgmr.msra.gmra.mrb[36].mxu0 %vm415_vm4, %v1096_v35 }
 0x981   :  { %1555 = vmatpush3.bf16.msra.mxu1 %v1605_v18 }
 0x982   :  { %1556 = vmatprep.subr.bf16.mxu1 %v1739_v0 }
 0x985   :  { %1557 = vmatpush3.bf16.msra.mxu1 %v1606_v34 }
 0x986   :  { %1558 = vmatprep.subr.bf16.mxu1 %v1739_v0  ;;  %v1583_v0 = vunpack.i.l.bf16 %v1582_v46 }
 0x988   :  { %v1217_v52 = vsel %vm322_vm2, %v1970_v12, %v1583_v0 }
 0x989   :  { %1559 = vmatpush3.bf16.msra.mxu1 %v1607_v29  ;;  %v1219_v55 = vsel %vm115_vm1, %v1217_v52, %v1588_v49 }
 0xa4f   :  { %v1139_v36 = vpop.f32.mrb[32].mxu1 }
 0xa50   :  { %v1544_v37 = vpop.f32.mrb[33].mxu1 }
 0xa51   :  { %v1142_v39 = vpop.f32.mrb[34].mxu1 }
 0xa52   :  { %v1545_v40 = vpop.f32.mrb[35].mxu1 }
 0xa53   :  { %v1187_v41 = vpop.f32.mrb[36].mxu0 }
 0xa54   :  { %v1590_v42 = vpack.i.bf16 %v1187_v41, %v1139_v36  ;;  %v1550_v43 = vpop.f32.mrb[37].mxu0 }
 0xa55   :  { %v1190_v44 = vpop.f32.mrb[38].mxu0 }
 0xa56   :  { %1591 = vrot.lane.b32.xlu0 %v1590_v42, %s1746_s29  ;;  %v1551_v45 = vpop.f32.mrb[39].mxu0 }
 0xac8   :  { %v1592_v50 = vpop.permute.xlu0 %1591 }
 0xac9   :  { %v1594_v53 = vunpack.i.h.bf16 %v1592_v50  ;;  %v1593_v54 = vunpack.i.l.bf16 %v1592_v50 }
 0xacb   :  { %v1223_v57 = vsel %vm1221_vm5, %v1220_v56, %v1594_v53  ;;  %v1222_v58 = vsel %vm1221_vm5, %v1219_v55, %v1593_v54 }
 0xacc   :  { %v1385_v59 = vpack.c.bf16 %v1223_v57, %v1222_v58 }
 0xace   :  { %1561 = vmatmul.mubr.msk.bf16.vlgmr.msra.gmra.mrb[36].mxu1 %vm1270_vm6, %v1385_v59 }
 0xba1   :  { %v1308_v61 = vpop.f32.mrb[36].mxu1 }
 0xba2   :  { %v1309_v17 = vadd.f32 %v1372_v60, %v1308_v61  ;;  %v1562_v12 = vpop.f32.mrb[37].mxu1 }
 0xba3   :  { %v1311_v62 = vpop.f32.mrb[38].mxu1 }
 0xba4   :  { %1315 = vst.msk [vmem:[#allocation8] sm:$0xff] %vm115_vm1, %v1309_v17  ;;  %v1312_v63 = vadd.f32 %v1372_v60, %v1311_v62  ;;  %v1563_v2 = vpop.f32.mrb[39].mxu1 }
 0xba6   :  { %1316 = vst.msk [vmem:[#allocation8 + $0x8] sm:$0xff] %vm115_vm1, %v1312_v63 }
 0xba7   :  { %1717 = shalt.err (!%p1714_p0)
}
 0xba8   :  { %s1718_s18 = scalar_lea.hbm %s2119_s11, 256 }
 0xba9   :  { %p1719_p1 = scmp.ne.s32.totalorder %s2119_s11, %s1718_s18  ;;  %p1722_p2 = scmp.lt.u32.totalorder %s1718_s18, %s2119_s11 }
 0xbab   :  { %p1724_p3 = pnand %p1722_p2, %p1719_p1 }
 0xbad   :  { %1727 = shalt.err (!%p1724_p3)
}
 0xbae   :  { %s1748_s25 = smov 128   ;;  %s1749_s26 = smov 8  }
 0xbaf   :  { %1328 = dma.vmem_to_hbm [thread:$0]  %s1323_s22, 256, %s2119_s11, [#allocation4], %s1748_s25, %s1748_s25, %s1749_s26  }
 0xbb0   :  { %1732 = dma.done.wait [#allocation4], 256  }
 0xbb1   :  { %1733 = vsyncadd [#allocation4], 4294967040 }
 0xbb2   :  { %1332 = vsyncpa [#allocation3], 1 }
 0xbb3   :  { %1333 = vsyncpa [#allocation6], 1 }
 0xbb4   :  { %1334 = vsyncpa [#allocation4], 1 }

</bundles_post_ra>
